<compile_context>
chip_gen: v5e
topology: v5e:2x2
jax: 0.10.0
libtpu: 0.0.40
codegen_flags: <defaults>
</compile_context>

<pallas_src>
import jax
import jax.numpy as jnp
from jax.experimental import pallas as pl
from jax.experimental.pallas import tpu as pltpu


# ---------------------------------------------------------------------------
# Kernel
# ---------------------------------------------------------------------------
def _mscam_kernel(x_ref, w1_ref, t1_ref, w2_ref, t2_ref, o_ref):
    """One (C, TPW) pixel tile of MS_CAM with both branches fused."""
    x = x_ref[...]                                                     # (C, TPW)

    # Fused first 1x1 convs (local || global); BN scale folded into weights.
    h = jnp.dot(w1_ref[...], x,
                preferred_element_type=jnp.float32,
                precision=jax.lax.Precision.HIGHEST)                   # (2Ci, TPW)
    h = jnp.maximum(h + t1_ref[...], 0.0)

    # Fused second 1x1 convs; xl + xg realized as a single matmul.
    y = jnp.dot(w2_ref[...], h,
                preferred_element_type=jnp.float32,
                precision=jax.lax.Precision.HIGHEST)                   # (C, TPW)
    wei = jax.nn.sigmoid(y + t2_ref[...])

    o_ref[...] = (x.astype(jnp.float32) * wei).astype(o_ref.dtype)


# ---------------------------------------------------------------------------
# Parameter folding / fusing (wrapper-side, free under XLA)
# ---------------------------------------------------------------------------
def _fold_conv_bn(w, b, gamma, beta, mean, var, eps=1e-5):
    """Fold 1x1-conv bias + eval-mode BN into a (Cout, Cin) weight and (Cout,1) shift."""
    scale = gamma / jnp.sqrt(var + eps)
    w_folded = w * scale[:, None]
    shift = (scale * (b - mean) + beta)[:, None]
    return w_folded, shift


def _fuse_branches(local, glob):
    """Concatenate the two (folded) branches into one pair of matmuls."""
    (w1l, t1l), (w2l, t2l) = local
    (w1g, t1g), (w2g, t2g) = glob
    w1cat = jnp.concatenate([w1l, w1g], axis=0)   # (2Ci, C)
    t1cat = jnp.concatenate([t1l, t1g], axis=0)   # (2Ci, 1)
    w2cat = jnp.concatenate([w2l, w2g], axis=1)   # (C, 2Ci)
    t2sum = t2l + t2g                             # (C, 1)   since xl + xg
    return w1cat, t1cat, w2cat, t2sum


# ---------------------------------------------------------------------------
# Tile selection
# ---------------------------------------------------------------------------
def _choose_pixel_tile(P, tile_pw):
    """Pick a lane-dense pixel tile: <= tile_pw, multiple of 128 (when P > 128),
    preferring a divisor of P so the final block's stores are unmasked."""
    if P <= tile_pw:
        return P
    tpw = max(128, (tile_pw // 128) * 128)
    # Search downward (in 128 steps) for a divisor of P; stop at half the target.
    cand = tpw
    while cand >= max(128, tpw // 2):
        if P % cand == 0:
            return cand
        cand -= 128
    return tpw  # partial final block -> Pallas masked stores (still correct)


# ---------------------------------------------------------------------------
# Forward wrapper
# ---------------------------------------------------------------------------
def ms_cam_forward(x_nchw, fused_params, *, tile_pw=8192):
    """MS_CAM forward.  x_nchw: (N, C, H, W).  Returns same shape/dtype.

    tile_pw is the primary tuning knob (pixels per block).  8192 is a good
    default for all of v5e/v6e/v7x; v7x can go to 16384 for peak roofline.
    """
    N, C, H, W = x_nchw.shape
    P = H * W
    w1cat, t1cat, w2cat, t2sum = fused_params
    Ci2 = w1cat.shape[0]

    # Channel-major, zero-copy view: (N, C, P).
    x3 = x_nchw.reshape(N, C, P)

    tpw = _choose_pixel_tile(P, tile_pw)
    num_ptiles = pl.cdiv(P, tpw)
    # Large pixel-tile axis FIRST so v7x's 2 TensorCores split it evenly even
    # when N == 1.
    grid = (num_ptiles, N)

    itemsize = jnp.dtype(x_nchw.dtype).itemsize
    # Working-set estimate: double-buffered x + out blocks, params, in-body
    # intermediates (h, wei, f32 copy of x).  Cap at 64 MiB (v7x physical VMEM
    # per TC); keep >= 32 MiB so the scoped default never shrinks us.
    block_bytes = C * tpw * itemsize
    vmem_est = 4 * block_bytes                                   # x/out, 2 bufs each
    vmem_est += 2 * (Ci2 * C + Ci2 + C * Ci2 + C) * 4            # params (2 bufs)
    vmem_est += (Ci2 + 2 * C) * tpw * 4                          # h, wei, x_f32
    vmem_limit = int(min(64 << 20, max(32 << 20, int(vmem_est * 1.5))))

    cost = pl.CostEstimate(
        flops=4 * Ci2 * C * N * P,             # two fused matmuls
        transcendentals=N * C * P,             # sigmoid exp
        bytes_accessed=2 * N * C * P * itemsize,
    )

    def fixed(shape):
        return pl.BlockSpec(shape, lambda j, n: (0, 0))

    out3 = pl.pallas_call(
        _mscam_kernel,
        out_shape=jax.ShapeDtypeStruct((N, C, P), x_nchw.dtype),
        grid=grid,
        in_specs=[
            pl.BlockSpec((None, C, tpw), lambda j, n: (n, 0, j)),  # x tile (C, TPW)
            fixed((Ci2, C)),   # fused conv1 weights (BN-folded)
            fixed((Ci2, 1)),   # fused conv1 shifts
            fixed((C, Ci2)),   # fused conv2 weights (BN-folded)
            fixed((C, 1)),     # combined conv2 shift (local + global)
        ],
        out_specs=pl.BlockSpec((None, C, tpw), lambda j, n: (n, 0, j)),
        compiler_params=pltpu.CompilerParams(
            dimension_semantics=("parallel", "parallel"),
            vmem_limit_bytes=vmem_limit),
        cost_estimate=cost,
    )(x3, w1cat, t1cat, w2cat, t2sum)

    return out3.reshape(N, C, H, W)


# ---------------------------------------------------------------------------
# Reference (pure JAX, unfused, unfolded) + demo
# ---------------------------------------------------------------------------
def _make_conv_bn_raw(key, cin, cout):
    kw, kb, kg, kbe, km, kv = jax.random.split(key, 6)
    w = jax.random.normal(kw, (cout, cin), jnp.float32) * 0.1      # Conv2d 1x1
    b = jax.random.normal(kb, (cout,), jnp.float32) * 0.1
    gamma = jax.random.uniform(kg, (cout,), jnp.float32, minval=0.5, maxval=1.5)
    beta = jax.random.normal(kbe, (cout,), jnp.float32) * 0.1
    mean = jax.random.normal(km, (cout,), jnp.float32) * 0.1
    var = jax.random.uniform(kv, (cout,), jnp.float32, minval=0.5, maxval=1.5)
    return (w, b, gamma, beta, mean, var)


def _reference_forward(x_nchw, raw, eps=1e-5):
    """Unfused/unfolded pure-JAX reference mirroring the PyTorch module."""
    N, C, H, W = x_nchw.shape
    x3 = x_nchw.reshape(N, C, H * W).astype(jnp.float32)

    def conv_bn(x, p):
        w, b, gamma, beta, mean, var = p
        y = jnp.einsum("oc,ncp->nop", w, x) + b[None, :, None]
        y = (y - mean[None, :, None]) / jnp.sqrt(var + eps)[None, :, None]
        return y * gamma[None, :, None] + beta[None, :, None]

    def branch(ps):
        h = jnp.maximum(conv_bn(x3, ps[0]), 0.0)
        return conv_bn(h, ps[1])

    wei = jax.nn.sigmoid(branch(raw["local"]) + branch(raw["global"]))
    return (x3 * wei).reshape(N, C, H, W)


if __name__ == "__main__":
    # Shapes consistent with the module defaults (channels=64, r=4), small spatial.
    N, C, H, W, r = 2, 64, 16, 16, 4
    Ci = C // r

    key = jax.random.PRNGKey(0)
    kx, k1, k2, k3, k4 = jax.random.split(key, 5)

    x = jax.random.normal(kx, (N, C, H, W), jnp.float32)

    raw = {
        "local": (_make_conv_bn_raw(k1, C, Ci), _make_conv_bn_raw(k2, Ci, C)),
        # global branch: AdaptiveAvgPool2d target == input spatial -> identity
        "global": (_make_conv_bn_raw(k3, C, Ci), _make_conv_bn_raw(k4, Ci, C)),
    }

    fused = _fuse_branches(
        (_fold_conv_bn(*raw["local"][0]), _fold_conv_bn(*raw["local"][1])),
        (_fold_conv_bn(*raw["global"][0]), _fold_conv_bn(*raw["global"][1])),
    )

    out = ms_cam_forward(x, fused)
    out = jax.block_until_ready(out)

    ref = _reference_forward(x, raw)
    assert out.shape == x.shape and out.dtype == x.dtype
    assert jnp.allclose(out, ref, atol=1e-4, rtol=1e-4), "mismatch vs reference"

    print("KERNEL_OK")
</pallas_src>

<mosaic_0001>
module attributes {stable_mosaic.version = 11 : i64} {
  func.func @_mscam_kernel(%arg0: i32, %arg1: i32, %arg2: memref<1x64x256xf32, #tpu.memory_space<vmem>>, %arg3: memref<32x64xf32, #tpu.memory_space<vmem>>, %arg4: memref<32x1xf32, #tpu.memory_space<vmem>>, %arg5: memref<64x32xf32, #tpu.memory_space<vmem>>, %arg6: memref<64x1xf32, #tpu.memory_space<vmem>>, %arg7: memref<1x64x256xf32, #tpu.memory_space<vmem>>) attributes {dimension_semantics = [#tpu.dimension_semantics<parallel>, #tpu.dimension_semantics<parallel>], iteration_bounds = array<i64: 1, 2>, scalar_prefetch = 0 : i64, scratch_operands = 0 : i64, tpu.core_type = #tpu.core_type<tc>, window_params = [{transform_indices = @transform_0, window_bounds = array<i64: 1, 64, 256>}, {pipeline_mode = #tpu.pipeline_mode<synchronous>, transform_indices = @transform_1, window_bounds = array<i64: 32, 64>}, {pipeline_mode = #tpu.pipeline_mode<synchronous>, transform_indices = @transform_2, window_bounds = array<i64: 32, 1>}, {pipeline_mode = #tpu.pipeline_mode<synchronous>, transform_indices = @transform_3, window_bounds = array<i64: 64, 32>}, {pipeline_mode = #tpu.pipeline_mode<synchronous>, transform_indices = @transform_4, window_bounds = array<i64: 64, 1>}, {transform_indices = @transform_5, window_bounds = array<i64: 1, 64, 256>}]} {
    %c0 = arith.constant 0 : index
    %c0_0 = arith.constant 0 : index
    %c0_1 = arith.constant 0 : index
    %0 = vector.load %arg2[%c0, %c0_0, %c0_1] : memref<1x64x256xf32, #tpu.memory_space<vmem>>, vector<1x64x256xf32>
    %1 = vector.shape_cast %0 : vector<1x64x256xf32> to vector<64x256xf32>
    %c0_2 = arith.constant 0 : index
    %c0_3 = arith.constant 0 : index
    %2 = vector.load %arg3[%c0_2, %c0_3] : memref<32x64xf32, #tpu.memory_space<vmem>>, vector<32x64xf32>
    %cst = arith.constant dense<0.000000e+00> : vector<32x256xf32>
    %3 = tpu.matmul %2, %1, %cst {dimension_numbers = #tpu.dot_dimension_numbers<[1], [0], [0], [1], [0, 0, 1, 1], [], []>, precision = #tpu.contract_precision<fp32>} : vector<32x64xf32>, vector<64x256xf32>, vector<32x256xf32> -> vector<32x256xf32>
    %c0_4 = arith.constant 0 : index
    %c0_5 = arith.constant 0 : index
    %4 = vector.load %arg4[%c0_4, %c0_5] : memref<32x1xf32, #tpu.memory_space<vmem>>, vector<32x1xf32>
    %5 = vector.broadcast %4 : vector<32x1xf32> to vector<32x256xf32>
    %6 = arith.addf %3, %5 : vector<32x256xf32>
    %cst_6 = arith.constant 0.000000e+00 : f32
    %7 = vector.broadcast %cst_6 : f32 to vector<32x256xf32>
    %8 = arith.maximumf %6, %7 : vector<32x256xf32>
    %c0_7 = arith.constant 0 : index
    %c0_8 = arith.constant 0 : index
    %9 = vector.load %arg5[%c0_7, %c0_8] : memref<64x32xf32, #tpu.memory_space<vmem>>, vector<64x32xf32>
    %cst_9 = arith.constant dense<0.000000e+00> : vector<64x256xf32>
    %10 = tpu.matmul %9, %8, %cst_9 {dimension_numbers = #tpu.dot_dimension_numbers<[1], [0], [0], [1], [0, 0, 1, 1], [], []>, precision = #tpu.contract_precision<fp32>} : vector<64x32xf32>, vector<32x256xf32>, vector<64x256xf32> -> vector<64x256xf32>
    %c0_10 = arith.constant 0 : index
    %c0_11 = arith.constant 0 : index
    %11 = vector.load %arg6[%c0_10, %c0_11] : memref<64x1xf32, #tpu.memory_space<vmem>>, vector<64x1xf32>
    %12 = vector.broadcast %11 : vector<64x1xf32> to vector<64x256xf32>
    %13 = arith.addf %10, %12 : vector<64x256xf32>
    %14 = arith.negf %13 : vector<64x256xf32>
    %15 = math.exp %14 : vector<64x256xf32>
    %cst_12 = arith.constant 1.000000e+00 : f32
    %16 = vector.broadcast %cst_12 : f32 to vector<64x256xf32>
    %17 = arith.addf %16, %15 : vector<64x256xf32>
    %18 = arith.divf %16, %17 : vector<64x256xf32>
    %19 = arith.mulf %1, %18 : vector<64x256xf32>
    %c0_13 = arith.constant 0 : index
    %c0_14 = arith.constant 0 : index
    %c0_15 = arith.constant 0 : index
    %20 = vector.load %arg7[%c0_13, %c0_14, %c0_15] : memref<1x64x256xf32, #tpu.memory_space<vmem>>, vector<1x64x256xf32>
    %21 = vector.shape_cast %20 : vector<1x64x256xf32> to vector<64x256xf32>
    %22 = vector.shape_cast %19 : vector<64x256xf32> to vector<1x64x256xf32>
    tpu.vector_store %arg7[%c0_13, %c0_14, %c0_15], %22 {strides = array<i32>} : memref<1x64x256xf32, #tpu.memory_space<vmem>>, vector<1x64x256xf32>,
    return
  }
  func.func @transform_0(%arg0: i32, %arg1: i32) -> (i32, i32, i32) {
    %c0_i32 = arith.constant 0 : i32
    %c0_i32_0 = arith.constant 0 : i32
    return %arg1, %c0_i32, %arg0 : i32, i32, i32
  }
  func.func @transform_1(%arg0: i32, %arg1: i32) -> (i32, i32) {
    %c0_i32 = arith.constant 0 : i32
    %c0_i32_0 = arith.constant 0 : i32
    %c0_i32_1 = arith.constant 0 : i32
    return %c0_i32, %c0_i32_0 : i32, i32
  }
  func.func @transform_2(%arg0: i32, %arg1: i32) -> (i32, i32) {
    %c0_i32 = arith.constant 0 : i32
    %c0_i32_0 = arith.constant 0 : i32
    %c0_i32_1 = arith.constant 0 : i32
    return %c0_i32, %c0_i32_0 : i32, i32
  }
  func.func @transform_3(%arg0: i32, %arg1: i32) -> (i32, i32) {
    %c0_i32 = arith.constant 0 : i32
    %c0_i32_0 = arith.constant 0 : i32
    %c0_i32_1 = arith.constant 0 : i32
    return %c0_i32, %c0_i32_0 : i32, i32
  }
  func.func @transform_4(%arg0: i32, %arg1: i32) -> (i32, i32) {
    %c0_i32 = arith.constant 0 : i32
    %c0_i32_0 = arith.constant 0 : i32
    %c0_i32_1 = arith.constant 0 : i32
    return %c0_i32, %c0_i32_0 : i32, i32
  }
  func.func @transform_5(%arg0: i32, %arg1: i32) -> (i32, i32, i32) {
    %c0_i32 = arith.constant 0 : i32
    %c0_i32_0 = arith.constant 0 : i32
    return %arg1, %c0_i32, %arg0 : i32, i32, i32
  }
}

</mosaic_0001>

<bundles_post_ra>
// kernel: tpu_custom_call.1
= control target key start
LH: loop header
LB: loop body
LE: loop exit
PB: predicated region body
PF: predicated region fallthrough
CT: control target
= control target key end

     0   :  { %10 = vsyncpa [#allocation3], 0  ;;  %s3744_s0 = inlined_call_operand.hbm [shape: f32[2,64,256], index: 0, kind: input, shape index: {}]   ;;  %s3745_s1 = inlined_call_operand.vmem [shape: f32[32,64], index: 1, kind: input, shape index: {}]   ;;  %s3746_s2 = inlined_call_operand.vmem [shape: f32[32,1], index: 2, kind: input, shape index: {}]   ;;  %s3747_s3 = inlined_call_operand.vmem [shape: f32[64,32], index: 3, kind: input, shape index: {}]   ;;  %s3748_s4 = inlined_call_operand.vmem [shape: f32[64,1], index: 4, kind: input, shape index: {}]   ;;  %s3749_s5 = inlined_call_operand.hbm [shape: f32[2,64,256], index: 5, kind: output, shape index: {}]  }
   0x1   :  { %12 = vsyncpa [#allocation3 + $0x1], 0 }
   0x2   :  { %13 = vsyncpa [#allocation4], 0 }
   0x3   :  { %15 = vsyncpa [#allocation4 + $0x1], 0  ;;  %s2648_s18 = smov 0   ;;  %s2650_s19 = smov 0  }
   0x4   :  { %s2652_s20 = smov 0   ;;  %s2654_s21 = smov 0  }
   0x5   :  { %s2656_s22 = smov 0   ;;  %s2658_s23 = smov 0  }
   0x6 LB: > { %s2316_s24 = sadd.s32 4294967295, %s2611_s23   ;;  %s2317_s25 = sadd.s32 4294967294, %s2611_s23   ;;  %s2611_s23 = sphi %s2658_s23, %s21_s23   ;;  %s2607_s22 = sphi %s2656_s22, %s3758_s22   ;;  %s2603_s21 = sphi %s2654_s21, %s3757_s21   ;;  %s2599_s20 = sphi %s2652_s20, %s3756_s20   ;;  %s2595_s19 = sphi %s2650_s19, %s3755_s19   ;;  %s2591_s18 = sphi %s2648_s18, %s3754_s18  }
   0x7   : > { %s30_s26 = sadd.s32 1, %s2607_s22  ;;  %s42_s27 = sadd.s32 1, %s2599_s20 }
   0x8   : > { %p31_p0 = scmp.ge.s32.totalorder %s30_s26, 2  ;;  %p49_p1 = scmp.ne.s32.totalorder %s2599_s20, %s2595_s19 }
   0x9   : > { %p50_p2 = scmp.eq.s32.totalorder %s2611_s23, 0  ;;  %p55_p3 = scmp.ne.s32.totalorder %s2595_s19, %s2591_s18 }
   0xa   : > { %s3760_s26 = smov (%p31_p0, %s30_s26), 0  ;;  %p56_p5 = scmp.eq.s32.totalorder %s2316_s24, 0 }
   0xb   : > { %p2689_p4 = por %p50_p2, %p49_p1  ;;  %s37_s29 = ssub.s32 %s2607_s22, %s3760_s26 }
   0xc   : > { %p165_p6 = scmp.eq.s32.totalorder %s2316_s24, 1  ;;  %p40_p7 = scmp.eq.s32.totalorder %s37_s29, 0 }
   0xd   : > { %p2695_p8 = por %p56_p5, %p55_p3  ;;  %p171_p10 = scmp.eq.s32.totalorder %s2317_s25, 1 }
   0xe   : > { %p2699_p9 = por %p165_p6, %p49_p1  ;;  %p2319_p12 = scmp.ge.s32.totalorder %s2611_s23, 2 }
   0xf   : > { %s2704_s7 = scalar_select %p40_p7, %s2599_s20, %s42_s27  }
  0x10   : > { %p2706_p11 = por %p171_p10, %p55_p3  ;;  %p2361_p13 = scmp.lt.s32.totalorder %s2611_s23, 2 }
  0x11   : > { %s203_s9 = sand.u32 1, %s2599_s20   ;;  %s2347_s11 = sshll.u32 %s2607_s22, 7 }
  0x12   : > { %s2320_s10 = sshll.u32 %s203_s9, 7  ;;  %s214_s14 = scalar_lea.hbm %s3744_s0, %s2347_s11 }
  0x13   : > { %s207_s15 = scalar_lea.vmem [#allocation2], %s2320_s10  ;;  %s215_s17 = sshll.u32 %s214_s14, 4  ;;  %s216_s17 = int_to_ptr.hbm [resolvable:$true] %s215_s17 }
  0x14   : > { %s217_s16 = sshll.u32 %s207_s15, 4  ;;  %p2354_p0 = pnand %p2361_p13, %p2689_p4  ;;  %s218_s16 = int_to_ptr.vmem [resolvable:$true] %s217_s16 }
  0x15   : > { %p2323_p1 = scmp.ge.s32.totalorder %s2611_s23, 1  ;;  %s204_s24 = scalar_lea.sflag [#allocation3], %s203_s9 }
  0x16   : > { %s2613_s25 = smov 256   ;;  %s2614_s27 = smov 16  }
  0x17   : > { %2356 = dma.hbm_to_vmem [thread:$0]  (!%p2354_p0), %s216_s17, 2048, %s218_s16, %s204_s24, %s2613_s25, %s2613_s25, %s2614_s27  }
  0x18   : > { %p225_p2 = scmp.lt.s32.totalorder %s2611_s23, 3 }
  0x1a   : > { %p226_p3 = pnand %p2323_p1, %p225_p2 }
  0x1b   : > { %s2722_s29 = sand.u32 (!%p226_p3), 1, %s2595_s19  }
  0x1c   : > { %229 = sbr.rel (%p226_p3) target bundleno = 615 (0x267), region = 40  ;;  %s2324_s10 = sshll.u32 (!%p226_p3), %s2722_s29, 7 }
  0x1d   : > { %s232_s11 = scalar_lea.sflag (!%p226_p3), [#allocation3], %s2722_s29  ;;  %s2728_s28 = scalar_lea.vmem (!%p226_p3), [#allocation2], %s2324_s10 }
  0x21   : > { %2582 = dma.done.wait (%p2695_p8), %s232_s11, 2048  }
  0x22   : > { %2584 = vsyncadd (%p2695_p8), %s232_s11, 4294965248  ;;  %v2615_v0 = vmov 0   ;;  %v279_v1 = vld [vmem:[%s2728_s28 + $0x70] sm:$0xff]  ;;  %v277_v2 = vld [vmem:[%s2728_s28 + $0x60] sm:$0xff]  ;;  %vm309_vm0 = vcmask 523264   ;;  %vm1046_vm1 = vcmask 261120  }
  0x23   : > { %2417 = vset.pattern.permute.xlu1 %v2615_v0  ;;  %2416 = vset.pattern.permute.xlu0 %v2615_v0  ;;  %v275_v3 = vld [vmem:[%s2728_s28 + $0x50] sm:$0xff]  ;;  %v2737_v4 = vand.u32 4294901760, %v279_v1  ;;  %v2739_v5 = vand.u32 4294901760, %v277_v2  ;;  %v273_v7 = vld [vmem:[%s2728_s28 + $0x40] sm:$0xff]  ;;  %v286_v20 = vld [vmem:[%s3746_s2 + $0x8] sm:$0xff]  ;;  %s3566_s30 = scalar_lea.vmem [#allocation5], %s2324_s10 }
  0x24   : > { %2418 = vset.pattern.permute.xlu2 %v2615_v0  ;;  %v2741_v6 = vand.u32 4294901760, %v275_v3  ;;  %v271_v8 = vld [vmem:[%s2728_s28 + $0x30] sm:$0xff]  ;;  %v269_v9 = vld [vmem:[%s2728_s28 + $0x20] sm:$0xff]  ;;  %v2746_v10 = vand.u32 4294901760, %v273_v7  ;;  %296 = vperm.xlu1 %2417, %v286_v20   ;;  %v282_v39 = vld [vmem:[%s3745_s1 + $0x8] sm:$0xff]  ;;  %s2348_s10 = sshll.u32 %s2603_s21, 7 }
  0x25   : > { %v2748_v11 = vand.u32 4294901760, %v271_v8  ;;  %v2750_v12 = vand.u32 4294901760, %v269_v9  ;;  %v267_v13 = vld [vmem:[%s2728_s28 + $0x10] sm:$0xff]  ;;  %v265_v14 = vld [vmem:[%s2728_s28] sm:$0xff]  ;;  %331 = vmatpush.msra.mxu0 %v2737_v4  ;;  %v2756_v15 = vsub.f32 %v279_v1, %v2737_v4  ;;  %v2759_v16 = vsub.f32 %v277_v2, %v2739_v5  ;;  %514 = vmatpush.msra.mxu3 %v2737_v4  ;;  %v280_v46 = vld [vmem:[%s2728_s28 + $0x78] sm:$0xff]  ;;  %s2225_s13 = scalar_lea.hbm %s3749_s5, %s2348_s10  ;;  %s2226_s14 = sshll.u32 %s3566_s30, 4  ;;  %s2227_s14 = int_to_ptr.vmem [resolvable:$true] %s2226_s14 }
  0x26   : > { %v2763_v17 = vsub.f32 %v275_v3, %v2741_v6  ;;  %v2765_v18 = vand.u32 4294901760, %v267_v13  ;;  %v281_v19 = vld [vmem:[%s3745_s1] sm:$0xff]  ;;  %v2774_v21 = vsub.f32 %v273_v7, %v2746_v10  ;;  %v2782_v24 = vand.u32 4294901760, %v265_v14  ;;  %v283_v40 = vld [vmem:[%s3745_s1 + $0x10] sm:$0xff]  ;;  %v278_v47 = vld [vmem:[%s2728_s28 + $0x68] sm:$0xff]  ;;  %s2228_s21 = sshll.u32 %s2225_s13, 4  ;;  %s2229_s21 = int_to_ptr.hbm [resolvable:$true] %s2228_s21 }
  0x27   : > { %v2777_v22 = vsub.f32 %v271_v8, %v2748_v11  ;;  %v2780_v23 = vsub.f32 %v269_v9, %v2750_v12  ;;  %333 = vmatpush.msra.mxu0 %v2739_v5  ;;  %462 = vmatpush.msra.mxu2 %v2756_v15  ;;  %v389_v25 = vand.u32 4294901760, %v2756_v15  ;;  %v395_v26 = vand.u32 4294901760, %v2759_v16  ;;  %v276_v52 = vld [vmem:[%s2728_s28 + $0x58] sm:$0xff]  ;;  %v274_v61 = vld [vmem:[%s2728_s28 + $0x48] sm:$0xff]  ;;  %s2212_s15 = scalar_lea.sflag [#allocation4], %s2722_s29  ;;  %s2543_s16 = sshra.s32 %s2229_s21, 4  ;;  %s2544_s16 = int_to_ptr.hbm [resolvable:$true] %s2543_s16 }
  0x28   : > { %v401_v27 = vand.u32 4294901760, %v2763_v17  ;;  %516 = vmatpush.msra.mxu3 %v2739_v5  ;;  %v407_v28 = vand.u32 4294901760, %v2774_v21  ;;  %v2792_v29 = vsub.f32 %v267_v13, %v2765_v18  ;;  %v311_v30 = vsel %vm309_vm0, %v281_v19, 0  ;;  %v272_v1 = vld [vmem:[%s2728_s28 + $0x38] sm:$0xff]  ;;  %s2545_s17 = scalar_lea.hbm %s2544_s16, 128  ;;  %s2549_s27 = scalar_lea.hbm %s3749_s5, 256 }
  0x29   : > { %v413_v31 = vand.u32 4294901760, %v2777_v22  ;;  %335 = vmatpush.msra.mxu0 %v2741_v6  ;;  %465 = vmatpush.msra.mxu2 %v2759_v16  ;;  %v390_v32 = vsub.f32 %v2756_v15, %v389_v25  ;;  %v396_v33 = vsub.f32 %v2759_v16, %v395_v26  ;;  %v2807_v35 = vand.u32 4294901760, %v311_v30  ;;  %v284_v19 = vld [vmem:[%s3745_s1 + $0x18] sm:$0xff]  ;;  %p2546_p4 = scmp.ne.s32.totalorder %s2544_s16, %s2545_s17  ;;  %p2550_p7 = scmp.lt.s32.totalorder %s2544_s16, %s3749_s5 }
  0x2a   : > { %v402_v34 = vsub.f32 %v2763_v17, %v401_v27  ;;  %518 = vmatpush.msra.mxu3 %v2741_v6  ;;  %v408_v36 = vsub.f32 %v2774_v21, %v407_v28  ;;  %v2814_v37 = vsub.f32 %v265_v14, %v2782_v24  ;;  %v419_v38 = vand.u32 4294901760, %v2780_v23  ;;  %p2551_p8 = scmp.lt.s32.totalorder %s2549_s27, %s2545_s17 }
  0x2b   : > { %337 = vmatpush.msra.mxu0 %v2746_v10  ;;  %468 = vmatpush.msra.mxu2 %v2763_v17  ;;  %v391_v41 = vand.u32 4294901760, %v390_v32  ;;  %v397_v42 = vand.u32 4294901760, %v396_v33  ;;  %v2826_v43 = vsub.f32 %v311_v30, %v2807_v35  ;;  %v414_v44 = vsub.f32 %v2777_v22, %v413_v31  ;;  %v270_v30 = vld [vmem:[%s2728_s28 + $0x28] sm:$0xff]  ;;  %p2547_p5 = pnand %p2546_p4, %p2699_p9 }
  0x2c   : > { %520 = vmatpush.msra.mxu3 %v2746_v10  ;;  %v425_v45 = vand.u32 4294901760, %v2792_v29  ;;  %v403_v48 = vand.u32 4294901760, %v402_v34  ;;  %v314_v50 = vsel %vm309_vm0, %v282_v39, 0  ;;  %v317_v51 = vsel %vm309_vm0, %v283_v40, 0  ;;  %p2552_p10 = por %p2551_p8, %p2550_p7 }
  0x2d   : > { %339 = vmatpush.msra.mxu0 %v2748_v11  ;;  %392 = vmatpush.msra.mxu1 %v391_v41  ;;  %v2837_v49 = vand.u32 4294901760, %v2826_v43  ;;  %v409_v53 = vand.u32 4294901760, %v408_v36  ;;  %v420_v54 = vsub.f32 %v2780_v23, %v419_v38  ;;  %v431_v55 = vand.u32 4294901760, %v2814_v37  ;;  %p2548_p6 = pneg %p2547_p5 }
  0x2e   : > { %471 = vmatpush.msra.mxu2 %v2774_v21  ;;  %522 = vmatpush.msra.mxu3 %v2748_v11  ;;  %v2848_v56 = vand.u32 4294901760, %v314_v50  ;;  %v2853_v58 = vand.u32 4294901760, %v317_v51  ;;  %v2855_v59 = vand.u32 4294901760, %v280_v46  ;;  %v2857_v60 = vand.u32 4294901760, %v278_v47 }
  0x2f   : > { %341 = vmatpush.msra.mxu0 %v2750_v12  ;;  %398 = vmatpush.msra.mxu1 %v397_v42  ;;  %v349_v57 = vsub.f32 %v2826_v43, %v2837_v49  ;;  %v426_v62 = vsub.f32 %v2792_v29, %v425_v45  ;;  %v2868_v0 = vand.u32 4294901760, %v276_v52  ;;  %v415_v3 = vand.u32 4294901760, %v414_v44  ;;  %v285_v42 = vld [vmem:[%s3746_s2] sm:$0xff]  ;;  %p2553_p13 = pnand %p2552_p10, %p2548_p6 }
  0x30   : > { %474 = vmatpush.msra.mxu2 %v2777_v22  ;;  %524 = vmatpush.msra.mxu3 %v2750_v12  ;;  %v2866_v63 = vsub.f32 %v314_v50, %v2848_v56  ;;  %v2875_v7 = vsub.f32 %v280_v46, %v2855_v59  ;;  %v2878_v8 = vsub.f32 %v278_v47, %v2857_v60  ;;  %v421_v9 = vand.u32 4294901760, %v420_v54  ;;  %v268_v50 = vld [vmem:[%s2728_s28 + $0x18] sm:$0xff] }
  0x31   : > { %343 = vmatpush.msra.mxu0 %v2765_v18  ;;  %404 = vmatpush.msra.mxu1 %v403_v48  ;;  %v2872_v2 = vand.u32 4294901760, %v349_v57  ;;  %v432_v13 = vsub.f32 %v2814_v37, %v431_v55  ;;  %v2891_v20 = vand.u32 4294901760, %v274_v61  ;;  %v2896_v32 = vsub.f32 %v317_v51, %v2853_v58 }
  0x32   : > { %477 = vmatpush.msra.mxu2 %v2780_v23  ;;  %526 = vmatpush.msra.mxu3 %v2765_v18  ;;  %v2886_v14 = vand.u32 4294901760, %v2866_v63  ;;  %v719_v33 = vand.u32 4294901760, %v2875_v7  ;;  %v2900_v34 = vsub.f32 %v276_v52, %v2868_v0  ;;  %v2902_v36 = vand.u32 4294901760, %v272_v1  ;;  %v287_v23 = vld [vmem:[%s3746_s2 + $0x10] sm:$0xff] }
  0x33   : > { %345 = vmatpush.msra.mxu0 %v2782_v24  ;;  %410 = vmatpush.msra.mxu1 %v409_v53  ;;  %v427_v39 = vand.u32 4294901760, %v426_v62  ;;  %v725_v41 = vand.u32 4294901760, %v2878_v8  ;;  %v320_v46 = vsel %vm309_vm0, %v284_v19, 0  ;;  %v2918_v47 = vsub.f32 %v274_v61, %v2891_v20 }
  0x34   : > { %480 = vmatpush.msra.mxu2 %v2792_v29  ;;  %351 = vmatmul.f32.vlgmr.msra.gmra.mxu0 %v2872_v2  ;;  %v357_v40 = vsub.f32 %v2866_v63, %v2886_v14  ;;  %v720_v44 = vsub.f32 %v2875_v7, %v719_v33  ;;  %v2920_v48 = vand.u32 4294901760, %v270_v30  ;;  %v731_v51 = vand.u32 4294901760, %v2900_v34 }
  0x35   : > { %416 = vmatpush.msra.mxu1 %v415_v3  ;;  %528 = vmatpush.msra.mxu3 %v2782_v24  ;;  %v433_v52 = vand.u32 4294901760, %v432_v13  ;;  %v2928_v53 = vand.u32 4294901760, %v2896_v32  ;;  %v2931_v57 = vsub.f32 %v272_v1, %v2902_v36  ;;  %v726_v62 = vsub.f32 %v2878_v8, %v725_v41  ;;  %v266_v13 = vld [vmem:[%s2728_s28 + $0x8] sm:$0xff] }
  0x36   : > { %483 = vmatpush.msra.mxu2 %v2814_v37  ;;  %532 = vmatmul.f32.vlgmr.msra.gmra.mxu3 %v2837_v49  ;;  %v721_v54 = vand.u32 4294901760, %v720_v44  ;;  %v2933_v61 = vand.u32 4294901760, %v357_v40  ;;  %v2940_v3 = vand.u32 4294901760, %v320_v46  ;;  %v737_v1 = vand.u32 4294901760, %v2918_v47 }
  0x37   : > { %486 = vmatmul.f32.vlgmr.msra.gmra.mxu2 %v2826_v43  ;;  %422 = vmatpush.msra.mxu1 %v421_v9  ;;  %v2942_v9 = vand.u32 4294901760, %v268_v50  ;;  %v2948_v19 = vsub.f32 %v270_v30, %v2920_v48  ;;  %v732_v15 = vsub.f32 %v2900_v34, %v731_v51  ;;  %v2960_v40 = vand.u32 4294901760, %v266_v13 }
  0x38   : > { %291 = vperm.xlu1 %2417, %v285_v42   ;;  %565 = vmatpush.msrb.mxu0 %v389_v25  ;;  %v288_v25 = vld [vmem:[%s3746_s2 + $0x18] sm:$0xff]  ;;  %v365_v16 = vsub.f32 %v2896_v32, %v2928_v53  ;;  %v2970_v42 = vsub.f32 %v320_v46, %v2940_v3  ;;  %v738_v44 = vsub.f32 %v2918_v47, %v737_v1 }
  0x39   : > { %428 = vmatpush.msra.mxu1 %v427_v39  ;;  %661 = vmatpush.msrb.mxu2 %v2855_v59  ;;  %v743_v39 = vand.u32 4294901760, %v2931_v57  ;;  %v2963_v30 = vsub.f32 %v268_v50, %v2942_v9  ;;  %v749_v50 = vand.u32 4294901760, %v2948_v19  ;;  %v2988_v46 = vsub.f32 %v266_v13, %v2960_v40 }
  0x3a   : > { %569 = vmatpush.msrb.mxu0 %v395_v26  ;;  %722 = vmatpush.msrb.mxu3 %v721_v54  ;;  %v727_v26 = vand.u32 4294901760, %v726_v62  ;;  %v2990_v54 = vand.u32 4294901760, %v365_v16  ;;  %v2993_v62 = vand.u32 4294901760, %v2970_v42  ;;  %v739_v21 = vand.u32 4294901760, %v738_v44 }
  0x3b   : > { %434 = vmatpush.msra.mxu1 %v433_v52  ;;  %663 = vmatpush.msrb.mxu2 %v2857_v60  ;;  %v733_v52 = vand.u32 4294901760, %v732_v15  ;;  %v744_v17 = vsub.f32 %v2931_v57, %v743_v39  ;;  %v761_v22 = vand.u32 4294901760, %v2988_v46 }
  0x3c   : > { %359 = vmatmul.f32.gmra.mxu0 %v2933_v61  ;;  %436 = vmatmul.f32.vlgmr.msra.gmra.mxu1 %v2807_v35 }
  0x3d   : > { %573 = vmatpush.msrb.mxu0 %v401_v27  ;;  %665 = vmatpush.msrb.mxu2 %v2868_v0  ;;  %v755_v27 = vand.u32 4294901760, %v2963_v30  ;;  %v745_v13 = vand.u32 4294901760, %v744_v17  ;;  %v762_v15 = vsub.f32 %v2988_v46, %v761_v22 }
  0x3e   : > { %538 = vmatmul.f32.gmra.mxu3 %v2886_v14  ;;  %306 = vperm.xlu0 %2416, %v288_v25  }
  0x3f   : > { %491 = vmatmul.f32.gmra.mxu2 %v2866_v63  ;;  %577 = vmatpush.msrb.mxu0 %v407_v28  ;;  %v750_v28 = vsub.f32 %v2948_v19, %v749_v50 }
  0x40   : > { %728 = vmatpush.msrb.mxu3 %v727_v26  ;;  %620 = vmatpush.msrb.mxu1 %v2737_v4  ;;  %v756_v4 = vsub.f32 %v2963_v30, %v755_v27 }
  0x41   : > { %581 = vmatpush.msrb.mxu0 %v413_v31  ;;  %667 = vmatpush.msrb.mxu2 %v2891_v20  ;;  %v373_v31 = vsub.f32 %v2970_v42, %v2993_v62 }
  0x42   : > { %734 = vmatpush.msrb.mxu3 %v733_v52  ;;  %622 = vmatpush.msrb.mxu1 %v2739_v5  ;;  %v751_v5 = vand.u32 4294901760, %v750_v28 }
  0x43   : > { %585 = vmatpush.msrb.mxu0 %v419_v38  ;;  %669 = vmatpush.msrb.mxu2 %v2902_v36  ;;  %v757_v38 = vand.u32 4294901760, %v756_v4  ;;  %v3025_v25 = vand.u32 4294901760, %v373_v31 }
  0x44   : > { %367 = vmatmul.f32.gmra.mxu0 %v2990_v54  ;;  %440 = vmatmul.f32.gmra.mxu1 %v2848_v56 }
  0x45   : > { %740 = vmatpush.msrb.mxu3 %v739_v21  ;;  %589 = vmatpush.msrb.mxu0 %v425_v45 }
  0x46   : > { %544 = vmatmul.f32.gmra.mxu3 %v2928_v53  ;;  %624 = vmatpush.msrb.mxu1 %v2741_v6  ;;  %v763_v6 = vand.u32 4294901760, %v762_v15 }
  0x47   : > { %496 = vmatmul.f32.gmra.mxu2 %v2896_v32  ;;  %746 = vmatpush.msrb.mxu3 %v745_v13 }
  0x48   : > { %671 = vmatpush.msrb.mxu2 %v2920_v48  ;;  %593 = vmatpush.msrb.mxu0 %v431_v55 }
  0x49   : > { %626 = vmatpush.msrb.mxu1 %v2746_v10  ;;  %752 = vmatpush.msrb.mxu3 %v751_v5  ;;  %v1000_v10 = vld [vmem:[%s3748_s4 + $0x10] sm:$0xff] }
  0x4a   : > { %673 = vmatpush.msrb.mxu2 %v2942_v9  ;;  %301 = vperm.xlu0 %2416, %v287_v23  }
  0x4b   : > { %628 = vmatpush.msrb.mxu1 %v2748_v11  ;;  %758 = vmatpush.msrb.mxu3 %v757_v38  ;;  %v1001_v11 = vld [vmem:[%s3748_s4 + $0x18] sm:$0xff] }
  0x4c   : > { %375 = vmatmul.f32.gmra.mxu0 %v3025_v25  ;;  %444 = vmatmul.f32.gmra.mxu1 %v2853_v58 }
  0x4d   : > { %675 = vmatpush.msrb.mxu2 %v2960_v40  ;;  %630 = vmatpush.msrb.mxu1 %v2750_v12  ;;  %v1003_v12 = vld [vmem:[%s3748_s4 + $0x28] sm:$0xff] }
  0x4e   : > { %550 = vmatmul.f32.gmra.mxu3 %v2993_v62  ;;  %792 = vmatpush.msra.mxu0 %v2875_v7 }
  0x4f   : > { %501 = vmatmul.f32.gmra.mxu2 %v2970_v42  ;;  %764 = vmatpush.msrb.mxu3 %v763_v6 }
  0x50   : > { %632 = vmatpush.msrb.mxu1 %v2765_v18  ;;  %795 = vmatpush.msra.mxu0 %v2878_v8  ;;  %v1004_v18 = vld [vmem:[%s3748_s4 + $0x30] sm:$0xff] }
  0x51   : > { %895 = vmatpush.msra.mxu2 %v719_v33  ;;  %950 = vmatpush.msra.mxu3 %v2855_v59 }
  0x52   : > { %634 = vmatpush.msrb.mxu1 %v2782_v24  ;;  %798 = vmatpush.msra.mxu0 %v2900_v34 }
  0x53   : > { %899 = vmatpush.msra.mxu2 %v725_v41  ;;  %952 = vmatpush.msra.mxu3 %v2857_v60 }
  0x54   : > { %844 = vmatpush.msra.mxu1 %v2855_v59  ;;  %595 = vmatmul.f32.vlgmr.msrb.gmra.mxu0 %v2807_v35 }
  0x55   : > { %448 = vmatmul.f32.gmra.mxu1 %v2940_v3  ;;  %801 = vmatpush.msra.mxu0 %v2918_v47 }
  0x56   : > { %903 = vmatpush.msra.mxu2 %v731_v51  ;;  %766 = vmatmul.f32.vlgmr.msrb.gmra.mxu3 %v2807_v35 }
  0x57   : > { %846 = vmatpush.msra.mxu1 %v2857_v60  ;;  %681 = vmatmul.f32.vlgmr.msrb.gmra.mxu2 %v2872_v2 }
  0x58   : > { %804 = vmatpush.msra.mxu0 %v2931_v57  ;;  %907 = vmatpush.msra.mxu2 %v737_v1 }
  0x59   : > { %848 = vmatpush.msra.mxu1 %v2868_v0  ;;  %954 = vmatpush.msra.mxu3 %v2868_v0 }
  0x5a   : > { %807 = vmatpush.msra.mxu0 %v2948_v19  ;;  %911 = vmatpush.msra.mxu2 %v743_v39 }
  0x5b   : > { %1018 = vperm.xlu0 %2416, %v1000_v10   ;;  %956 = vmatpush.msra.mxu3 %v2891_v20 }
  0x5c   : > { %810 = vmatpush.msra.mxu0 %v2963_v30  ;;  %850 = vmatpush.msra.mxu1 %v2891_v20 }
  0x5d   : > { %599 = vmatmul.f32.gmra.mxu0 %v2848_v56  ;;  %636 = vmatmul.f32.vlgmr.msrb.gmra.mxu1 %v2807_v35 }
  0x5e   : > { %813 = vmatpush.msra.mxu0 %v2988_v46  ;;  %770 = vmatmul.f32.gmra.mxu3 %v2848_v56 }
  0x5f   : > { %689 = vmatmul.f32.gmra.mxu2 %v2933_v61  ;;  %958 = vmatpush.msra.mxu3 %v2902_v36 }
  0x60   : > { %915 = vmatpush.msra.mxu2 %v749_v50  ;;  %852 = vmatpush.msra.mxu1 %v2902_v36 }
  0x61   : > { %960 = vmatpush.msra.mxu3 %v2920_v48  ;;  %1023 = vperm.xlu1 %2417, %v1001_v11  }
  0x62   : > { %919 = vmatpush.msra.mxu2 %v755_v27  ;;  %854 = vmatpush.msra.mxu1 %v2920_v48 }
  0x63   : > { %962 = vmatpush.msra.mxu3 %v2942_v9  ;;  %1033 = vperm.xlu0 %2416, %v1003_v12  }
  0x64   : > { %923 = vmatpush.msra.mxu2 %v761_v22  ;;  %856 = vmatpush.msra.mxu1 %v2942_v9 }
  0x65   : > { %603 = vmatmul.f32.gmra.mxu0 %v2853_v58  ;;  %640 = vmatmul.f32.gmra.mxu1 %v2848_v56 }
  0x66   : > { %774 = vmatmul.f32.gmra.mxu3 %v2853_v58  ;;  %858 = vmatpush.msra.mxu1 %v2960_v40 }
  0x67   : > { %697 = vmatmul.f32.gmra.mxu2 %v2990_v54  ;;  %964 = vmatpush.msra.mxu3 %v2960_v40 }
  0x69   : > { %1038 = vperm.xlu1 %2417, %v1004_v18  }
  0x6d   : > { %607 = vmatmul.f32.gmra.mxu0 %v2940_v3  ;;  %644 = vmatmul.f32.gmra.mxu1 %v2853_v58 }
  0x6e   : > { %778 = vmatmul.f32.gmra.mxu3 %v2940_v3 }
  0x6f   : > { %705 = vmatmul.f32.gmra.mxu2 %v3025_v25  ;;  %v991_v25 = vld [vmem:[%s3747_s3 + $0x8] sm:$0xff] }
  0x70   : > { %v1051_v18 = vsel %vm1046_vm1, %v991_v25, 0 }
  0x75   : > { %648 = vmatmul.f32.gmra.mxu1 %v2940_v3  ;;  %816 = vmatmul.f32.vlgmr.msra.gmra.mxu0 %v2826_v43 }
  0x76   : > { %966 = vmatmul.f32.vlgmr.msra.gmra.mxu3 %v2807_v35 }
  0x77   : > { %925 = vmatmul.f32.vlgmr.msra.gmra.mxu2 %v2807_v35 }
  0x7d   : > { %821 = vmatmul.f32.gmra.mxu0 %v2866_v63  ;;  %862 = vmatmul.f32.vlgmr.msra.gmra.mxu1 %v2837_v49 }
  0x7e   : > { %970 = vmatmul.f32.gmra.mxu3 %v2848_v56 }
  0x7f   : > { %929 = vmatmul.f32.gmra.mxu2 %v2848_v56 }
  0x85   : > { %826 = vmatmul.f32.gmra.mxu0 %v2896_v32  ;;  %868 = vmatmul.f32.gmra.mxu1 %v2886_v14 }
  0x86   : > { %974 = vmatmul.f32.gmra.mxu3 %v2853_v58 }
  0x87   : > { %933 = vmatmul.f32.gmra.mxu2 %v2853_v58 }
  0x8d   : > { %831 = vmatmul.f32.gmra.mxu0 %v2970_v42  ;;  %874 = vmatmul.f32.gmra.mxu1 %v2928_v53  ;;  %v990_v42 = vld [vmem:[%s3747_s3] sm:$0xff] }
  0x8e   : > { %978 = vmatmul.f32.gmra.mxu3 %v2940_v3  ;;  %v1048_v27 = vsel %vm1046_vm1, %v990_v42, 0 }
  0x8f   : > { %937 = vmatmul.f32.gmra.mxu2 %v2940_v3  ;;  %v3154_v23 = vand.u32 4294901760, %v1048_v27 }
  0x91   : > { %v3160_v11 = vsub.f32 %v1048_v27, %v3154_v23 }
  0x95   : > { %880 = vmatmul.f32.gmra.mxu1 %v2993_v62 }
  0x96   : > { %v3128_v2 = vpop.permute.xlu1 %296 }
  0xaa   : > { %v3132_v33 = vpop.permute.xlu1 %291 }
  0xb0   : > { %v3126_v0 = vpop.permute.xlu0 %306 }
  0xb1   : > { %v352_v24 = vpop.f32.mrf.mxu0 }
  0xb2   : > { %v353_v53 = vadd.f32 %v352_v24, %v3132_v33 }
  0xb9   : > { %v360_v29 = vpop.f32.mrf.mxu0  ;;  %v437_v35 = vpop.f32.mrf.mxu1 }
  0xba   : > { %v487_v37 = vpop.f32.mrf.mxu2  ;;  %v533_v43 = vpop.f32.mrf.mxu3  ;;  %v361_v51 = vadd.f32 %v360_v29, %v3128_v2  ;;  %v438_v3 = vadd.f32 %v437_v35, %v353_v53 }
  0xbc   : > { %v3130_v32 = vpop.permute.xlu0 %301  ;;  %v488_v26 = vadd.f32 %v487_v37, %v438_v3 }
  0xbe   : > { %v534_v46 = vadd.f32 %v533_v43, %v488_v26 }
  0xc1   : > { %v368_v45 = vpop.f32.mrf.mxu0  ;;  %v441_v49 = vpop.f32.mrf.mxu1 }
  0xc2   : > { %v492_v55 = vpop.f32.mrf.mxu2  ;;  %v539_v56 = vpop.f32.mrf.mxu3  ;;  %v369_v41 = vadd.f32 %v368_v45, %v3130_v32  ;;  %v442_v61 = vadd.f32 %v441_v49, %v361_v51 }
  0xc4   : > { %v493_v16 = vadd.f32 %v492_v55, %v442_v61 }
  0xc6   : > { %v540_v52 = vadd.f32 %v539_v56, %v493_v16  ;;  %v3174_v56 = vand.u32 4294901760, %v3160_v11 }
  0xc9   : > { %v376_v58 = vpop.f32.mrf.mxu0  ;;  %v445_v59 = vpop.f32.mrf.mxu1 }
  0xca   : > { %v497_v60 = vpop.f32.mrf.mxu2  ;;  %v545_v63 = vpop.f32.mrf.mxu3  ;;  %v446_v57 = vadd.f32 %v445_v59, %v369_v41  ;;  %v377_v19 = vadd.f32 %v376_v58, %v3126_v0  ;;  %v3176_v58 = vand.u32 4294901760, %v1051_v18 }
  0xcc   : > { %v498_v39 = vadd.f32 %v497_v60, %v446_v57  ;;  %v992_v60 = vld [vmem:[%s3747_s3 + $0x10] sm:$0xff] }
  0xce   : > { %v546_v44 = vadd.f32 %v545_v63, %v498_v39 }
  0xd1   : > { %v596_v8 = vpop.f32.mrf.mxu0 }
  0xd2   : > { %v449_v7 = vpop.f32.mrf.mxu1  ;;  %v502_v14 = vpop.f32.mrf.mxu2  ;;  %v597_v31 = vadd.f32 %v596_v8, %v534_v46 }
  0xd3   : > { %v551_v20 = vpop.f32.mrf.mxu3  ;;  %v450_v50 = vadd.f32 %v449_v7, %v377_v19 }
  0xd5   : > { %v503_v28 = vadd.f32 %v502_v14, %v450_v50 }
  0xd7   : > { %v552_v6 = vadd.f32 %v551_v20, %v503_v28  ;;  %v1094_v20 = vsub.f32 %v3160_v11, %v3174_v56 }
  0xd9   : > { %v3207_v39 = vand.u32 4294901760, %v1094_v20 }
  0xda   : > { %v600_v34 = vpop.f32.mrf.mxu0  ;;  %v637_v36 = vpop.f32.mrf.mxu1 }
  0xdb   : > { %v3135_v47 = vpop.f32.mrf.mxu2  ;;  %v3137_v48 = vpop.f32.mrf.mxu3  ;;  %v601_v54 = vadd.f32 %v600_v34, %v540_v52  ;;  %v638_v38 = vadd.f32 %v637_v36, %v597_v31  ;;  %v3190_v34 = vsub.f32 %v1051_v18, %v3176_v58  ;;  %v1054_v36 = vsel %vm1046_vm1, %v992_v60, 0  ;;  %v993_v52 = vld [vmem:[%s3747_s3 + $0x18] sm:$0xff]  ;;  %v994_v18 = vld [vmem:[%s3747_s3 + $0x20] sm:$0xff] }
  0xdc   : > { %v3204_v19 = vand.u32 4294901760, %v1054_v36  ;;  %v683_v28 = vadd.f32 %v3135_v47, %v3132_v33  ;;  %v1060_v60 = vsel %vm1046_vm1, %v994_v18, 0 }
  0xdd   : > { %v982_v24 = vmax.f32 %v638_v38, 0.0  ;;  %v3210_v26 = vand.u32 4294901760, %v3190_v34 }
  0xde   : > { %v3219_v27 = vsub.f32 %v1054_v36, %v3204_v19 }
  0xdf   : > { %v3181_v63 = vand.u32 4294901760, %v982_v24 }
  0xe1   : > { %v1187_v57 = vsub.f32 %v982_v24, %v3181_v63 }
  0xe2   : > { %v604_v9 = vpop.f32.mrf.mxu0  ;;  %v641_v1 = vpop.f32.mrf.mxu1 }
  0xe3   : > { %v3142_v40 = vpop.f32.mrf.mxu2  ;;  %v3144_v30 = vpop.f32.mrf.mxu3  ;;  %v605_v17 = vadd.f32 %v604_v9, %v546_v44  ;;  %v642_v5 = vadd.f32 %v641_v1, %v601_v54  ;;  %v1188_v50 = vand.u32 4294901760, %v1187_v57 }
  0xe4   : > { %v691_v46 = vadd.f32 %v3142_v40, %v3128_v2 }
  0xe5   : > { %v984_v10 = vmax.f32 %v642_v5, 0.0  ;;  %v1189_v2 = vsub.f32 %v1187_v57, %v1188_v50 }
  0xe6   : > { %v772_v25 = vadd.f32 %v3144_v30, %v691_v46 }
  0xe7   : > { %v3171_v55 = vand.u32 4294901760, %v984_v10 }
  0xe9   : > { %v1181_v14 = vsub.f32 %v984_v10, %v3171_v55 }
  0xea   : > { %v608_v62 = vpop.f32.mrf.mxu0  ;;  %v645_v21 = vpop.f32.mrf.mxu1 }
  0xeb   : > { %v646_v13 = vadd.f32 %v645_v21, %v605_v17  ;;  %v3150_v4 = vpop.f32.mrf.mxu2  ;;  %v3152_v22 = vpop.f32.mrf.mxu3  ;;  %v609_v12 = vadd.f32 %v608_v62, %v552_v6  ;;  %v1182_v16 = vand.u32 4294901760, %v1181_v14  ;;  %v1102_v62 = vsub.f32 %v3190_v34, %v3210_v26 }
  0xec   : > { %v1057_v21 = vsel %vm1046_vm1, %v993_v52, 0  ;;  %v699_v40 = vadd.f32 %v3150_v4, %v3130_v32  ;;  %v768_v32 = vadd.f32 %v3137_v48, %v683_v28 }
  0xed   : > { %v986_v15 = vmax.f32 %v646_v13, 0.0  ;;  %v1183_v54 = vsub.f32 %v1181_v14, %v1182_v16  ;;  %v3238_v6 = vand.u32 4294901760, %v1102_v62  ;;  %v3240_v10 = vand.u32 4294901760, %v1057_v21 }
  0xee   : > { %v776_v24 = vadd.f32 %v3152_v22, %v699_v40 }
  0xef   : > { %v3163_v29 = vand.u32 4294901760, %v986_v15  ;;  %v1184_v47 = vand.u32 4294901760, %v1183_v54  ;;  %v3252_v48 = vsub.f32 %v1057_v21, %v3240_v10 }
  0xf1   : > { %v1175_v7 = vsub.f32 %v986_v15, %v3163_v29  ;;  %v3235_v15 = vand.u32 4294901760, %v3219_v27 }
  0xf2   : > { %v649_v35 = vpop.f32.mrf.mxu1  ;;  %v3165_v37 = vpop.f32.mrf.mxu0 }
  0xf3   : > { %v650_v43 = vadd.f32 %v649_v35, %v609_v12  ;;  %v3167_v45 = vpop.f32.mrf.mxu2  ;;  %v3169_v49 = vpop.f32.mrf.mxu3  ;;  %v1176_v61 = vand.u32 4294901760, %v1175_v7  ;;  %v1190_v12 = vand.u32 4294901760, %v1189_v2  ;;  %v1110_v30 = vsub.f32 %v3219_v27, %v3235_v15 }
  0xf4   : > { %v818_v35 = vadd.f32 %v3165_v37, %v768_v32  ;;  %v998_v37 = vld [vmem:[%s3748_s4] sm:$0xff] }
  0xf5   : > { %v988_v59 = vmax.f32 %v650_v43, 0.0  ;;  %v1177_v44 = vsub.f32 %v1175_v7, %v1176_v61  ;;  %1008 = vperm.xlu2 %2418, %v998_v37   ;;  %v997_v37 = vld [vmem:[%s3747_s3 + $0x38] sm:$0xff] }
  0xf7   : > { %v3184_v8 = vand.u32 4294901760, %v988_v59  ;;  %v1178_v31 = vand.u32 4294901760, %v1177_v44 }
  0xf9   : > { %v1169_v41 = vsub.f32 %v988_v59, %v3184_v8  ;;  %1084 = vmatpush.msrb.mxu0 %v3184_v8  ;;  %1303 = vmatpush.msrb.mxu3 %v3184_v8 }
  0xfa   : > { %v822_v51 = vpop.f32.mrf.mxu0  ;;  %v3196_v53 = vpop.f32.mrf.mxu1 }
  0xfb   : > { %1086 = vmatpush.msrb.mxu0 %v3163_v29  ;;  %1239 = vmatpush.msrb.mxu2 %v1169_v41  ;;  %v3200_v3 = vpop.f32.mrf.mxu2  ;;  %v3202_v9 = vpop.f32.mrf.mxu3  ;;  %v1170_v1 = vand.u32 4294901760, %v1169_v41  ;;  %v823_v4 = vadd.f32 %v822_v51, %v772_v25  ;;  %v864_v22 = vadd.f32 %v3196_v53, %v818_v35  ;;  %v3269_v53 = vand.u32 4294901760, %v3252_v48 }
  0xfc   : > { %1305 = vmatpush.msrb.mxu3 %v3163_v29 }
  0xfd   : > { %1088 = vmatpush.msrb.mxu0 %v3171_v55  ;;  %1242 = vmatpush.msrb.mxu2 %v1175_v7  ;;  %v1171_v42 = vsub.f32 %v1169_v41, %v1170_v1  ;;  %v1118_v44 = vsub.f32 %v3252_v48, %v3269_v53 }
  0xfe   : > { %1307 = vmatpush.msrb.mxu3 %v3171_v55 }
  0xff   : > { %1090 = vmatpush.msrb.mxu0 %v3181_v63  ;;  %1245 = vmatpush.msrb.mxu2 %v1181_v14  ;;  %v1172_v17 = vand.u32 4294901760, %v1171_v42  ;;  %v707_v14 = vadd.f32 %v3167_v45, %v3126_v0  ;;  %v995_v45 = vld [vmem:[%s3747_s3 + $0x28] sm:$0xff]  ;;  %v3294_v28 = vand.u32 4294901760, %v1118_v44 }
 0x100   : > { %1309 = vmatpush.msrb.mxu3 %v3181_v63  ;;  %1096 = vmatmul.f32.vlgmr.msrb.gmra.mxu0 %v3207_v39 }
 0x101   : > { %1374 = vmatpush.msra.mxu0 %v1170_v1  ;;  %1173 = vmatpush.msrb.mxu1 %v1172_v17  ;;  %v927_v1 = vadd.f32 %v3200_v3, %v864_v22 }
 0x102   : > { %1248 = vmatpush.msrb.mxu2 %v1187_v57  ;;  %v869_v13 = vpop.f32.mrf.mxu1  ;;  %1313 = vmatmul.f32.vlgmr.msrb.gmra.mxu3 %v3174_v56  ;;  %v827_v33 = vpop.f32.mrf.mxu0  ;;  %v3271_v57 = vand.u32 4294901760, %v1060_v60 }
 0x103   : > { %1251 = vmatmul.f32.vlgmr.msrb.gmra.mxu2 %v3160_v11  ;;  %1378 = vmatpush.msra.mxu0 %v1176_v61  ;;  %v930_v5 = vpop.f32.mrf.mxu2  ;;  %v971_v38 = vpop.f32.mrf.mxu3  ;;  %v870_v43 = vadd.f32 %v869_v13, %v823_v4  ;;  %v828_v59 = vadd.f32 %v827_v33, %v776_v24  ;;  %v968_v52 = vadd.f32 %v3202_v9, %v927_v1 }
 0x104   : > { %1179 = vmatpush.msrb.mxu1 %v1178_v31  ;;  %v3284_v3 = vsub.f32 %v1060_v60, %v3271_v57 }
 0x105   : > { %1382 = vmatpush.msra.mxu0 %v1182_v16  ;;  %v931_v51 = vadd.f32 %v930_v5, %v870_v43  ;;  %v780_v16 = vadd.f32 %v3169_v49, %v707_v14  ;;  %v983_v2 = vmax.f32 %v968_v52, 0.0  ;;  %v996_v5 = vld [vmem:[%s3747_s3 + $0x30] sm:$0xff] }
 0x106   : > { %1185 = vmatpush.msrb.mxu1 %v1184_v47  ;;  %v3297_v13 = vand.u32 4294901760, %v3284_v3  ;;  %v1066_v4 = vsel %vm1046_vm1, %v996_v5, 0 }
 0x107   : > { %1386 = vmatpush.msra.mxu0 %v1188_v50  ;;  %v972_v42 = vadd.f32 %v971_v38, %v931_v51 }
 0x108   : > { %1191 = vmatpush.msrb.mxu1 %v1190_v12  ;;  %1104 = vmatmul.f32.gmra.mxu0 %v3238_v6  ;;  %v1126_v33 = vsub.f32 %v3284_v3, %v3297_v13  ;;  %v3316_v12 = vand.u32 4294901760, %v983_v2 }
 0x109   : > { %1193 = vmatmul.f32.vlgmr.msrb.gmra.mxu1 %v3154_v23  ;;  %v985_v62 = vmax.f32 %v972_v42, 0.0 }
 0x10a   : > { %1433 = vmatpush.msra.mxu1 %v3184_v8  ;;  %v875_v7 = vpop.f32.mrf.mxu1  ;;  %1319 = vmatmul.f32.gmra.mxu3 %v3210_v26  ;;  %v3266_v8 = vand.u32 4294901760, %v1110_v30  ;;  %v832_v0 = vpop.f32.mrf.mxu0  ;;  %v3321_v30 = vand.u32 4294901760, %v1126_v33  ;;  %v1589_v22 = vsub.f32 %v983_v2, %v3316_v12  ;;  %v1005_v2 = vld [vmem:[%s3748_s4 + $0x38] sm:$0xff] }
 0x10b   : > { %v876_v20 = vadd.f32 %v875_v7, %v828_v59  ;;  %1256 = vmatmul.f32.gmra.mxu2 %v3190_v34  ;;  %v934_v36 = vpop.f32.mrf.mxu2  ;;  %v975_v41 = vpop.f32.mrf.mxu3  ;;  %v833_v50 = vadd.f32 %v832_v0, %v780_v16  ;;  %v3306_v25 = vand.u32 4294901760, %v985_v62  ;;  %v3327_v59 = vand.u32 4294901760, %v1066_v4 }
 0x10c   : > { %1435 = vmatpush.msra.mxu1 %v3163_v29  ;;  %v1590_v0 = vand.u32 4294901760, %v1589_v22 }
 0x10d   : > { %v935_v61 = vadd.f32 %v934_v36, %v876_v20  ;;  %v1583_v35 = vsub.f32 %v985_v62, %v3306_v25 }
 0x10e   : > { %1437 = vmatpush.msra.mxu1 %v3171_v55  ;;  %v1063_v55 = vsel %vm1046_vm1, %v995_v45, 0 }
 0x10f   : > { %v976_v29 = vadd.f32 %v975_v41, %v935_v61  ;;  %v3299_v9 = vand.u32 4294901760, %v1063_v55  ;;  %v1584_v36 = vand.u32 4294901760, %v1583_v35  ;;  %v3339_v41 = vsub.f32 %v1066_v4, %v3327_v59 }
 0x110   : > { %1439 = vmatpush.msra.mxu1 %v3181_v63  ;;  %1112 = vmatmul.f32.gmra.mxu0 %v3266_v8  ;;  %v999_v63 = vld [vmem:[%s3748_s4 + $0x8] sm:$0xff]  ;;  %v1069_v61 = vsel %vm1046_vm1, %v997_v37, 0 }
 0x111   : > { %1197 = vmatmul.f32.gmra.mxu1 %v3176_v58  ;;  %v987_v49 = vmax.f32 %v976_v29, 0.0  ;;  %1013 = vperm.xlu2 %2418, %v999_v63   ;;  %v3312_v47 = vsub.f32 %v1063_v55, %v3299_v9  ;;  %v1585_v29 = vsub.f32 %v1583_v35, %v1584_v36  ;;  %v3351_v42 = vand.u32 4294901760, %v3339_v41 }
 0x112   : > { %v881_v17 = vpop.f32.mrf.mxu1  ;;  %1325 = vmatmul.f32.gmra.mxu3 %v3235_v15  ;;  %v3353_v44 = vand.u32 4294901760, %v1069_v61  ;;  %v1591_v55 = vsub.f32 %v1589_v22, %v1590_v0 }
 0x113   : > { %v882_v46 = vadd.f32 %v881_v17, %v833_v50  ;;  %1261 = vmatmul.f32.gmra.mxu2 %v3219_v27  ;;  %v938_v54 = vpop.f32.mrf.mxu2  ;;  %v979_v21 = vpop.f32.mrf.mxu3  ;;  %v3301_v40 = vand.u32 4294901760, %v987_v49  ;;  %v3325_v43 = vand.u32 4294901760, %v3312_v47  ;;  %v1586_v52 = vand.u32 4294901760, %v1585_v29 }
 0x114   : > { %v3360_v17 = vsub.f32 %v1069_v61, %v3353_v44  ;;  %v1592_v63 = vand.u32 4294901760, %v1591_v55 }
 0x115   : > { %v939_v31 = vadd.f32 %v938_v54, %v882_v46  ;;  %v1577_v18 = vsub.f32 %v987_v49, %v3301_v40  ;;  %v1134_v20 = vsub.f32 %v3312_v47, %v3325_v43  ;;  %v1142_v49 = vsub.f32 %v3339_v41, %v3351_v42  ;;  %v1002_v46 = vld [vmem:[%s3748_s4 + $0x20] sm:$0xff] }
 0x116   : > { %v3369_v62 = vand.u32 4294901760, %v3360_v17 }
 0x117   : > { %v980_v38 = vadd.f32 %v979_v21, %v939_v31  ;;  %v1578_v7 = vand.u32 4294901760, %v1577_v18  ;;  %v3348_v16 = vand.u32 4294901760, %v1134_v20  ;;  %v1143_v54 = vand.u32 4294901760, %v1142_v49 }
 0x118   : > { %1120 = vmatmul.f32.gmra.mxu0 %v3294_v28  ;;  %v1150_v21 = vsub.f32 %v3360_v17, %v3369_v62 }
 0x119   : > { %v989_v32 = vmax.f32 %v980_v38, 0.0  ;;  %1201 = vmatmul.f32.gmra.mxu1 %v3204_v19  ;;  %v1579_v1 = vsub.f32 %v1577_v18, %v1578_v7  ;;  %1028 = vperm.xlu2 %2418, %v1002_v46  }
 0x11a   : > { %1331 = vmatmul.f32.gmra.mxu3 %v3269_v53  ;;  %v1151_v31 = vand.u32 4294901760, %v1150_v21 }
 0x11b   : > { %v1485_v24 = vand.u32 4294901760, %v989_v32  ;;  %1266 = vmatmul.f32.gmra.mxu2 %v3252_v48  ;;  %v1580_v50 = vand.u32 4294901760, %v1579_v1 }
 0x11d   : > { %v1571_v60 = vsub.f32 %v989_v32, %v1485_v24  ;;  %1486 = vmatpush.msra.mxu2 %v1485_v24  ;;  %1705 = vmatpush.msrb.mxu1 %v1485_v24 }
 0x11f   : > { %1488 = vmatpush.msra.mxu2 %v3301_v40  ;;  %1641 = vmatpush.msrb.mxu0 %v1571_v60  ;;  %v1572_v14 = vand.u32 4294901760, %v1571_v60 }
 0x120   : > { %1707 = vmatpush.msrb.mxu1 %v3301_v40  ;;  %1128 = vmatmul.f32.gmra.mxu0 %v3321_v30 }
 0x121   : > { %1205 = vmatmul.f32.gmra.mxu1 %v3240_v10  ;;  %1490 = vmatpush.msra.mxu2 %v3306_v25  ;;  %v1573_v51 = vsub.f32 %v1571_v60, %v1572_v14 }
 0x122   : > { %1644 = vmatpush.msrb.mxu0 %v1577_v18  ;;  %1709 = vmatpush.msrb.mxu1 %v3306_v25 }
 0x123   : > { %1271 = vmatmul.f32.gmra.mxu2 %v3284_v3  ;;  %1337 = vmatmul.f32.gmra.mxu3 %v3297_v13  ;;  %v1574_v45 = vand.u32 4294901760, %v1573_v51 }
 0x124   : > { %1492 = vmatpush.msra.mxu2 %v3316_v12  ;;  %1647 = vmatpush.msrb.mxu0 %v1583_v35 }
 0x125   : > { %1711 = vmatpush.msrb.mxu1 %v3316_v12  ;;  %1575 = vmatpush.msra.mxu3 %v1574_v45 }
 0x126   : > { %1776 = vmatpush.msrb.mxu2 %v1572_v14  ;;  %1650 = vmatpush.msrb.mxu0 %v1589_v22 }
 0x127   : > { %1581 = vmatpush.msra.mxu3 %v1580_v50  ;;  %1043 = vperm.xlu2 %2418, %v1005_v2  }
 0x128   : > { %1780 = vmatpush.msrb.mxu2 %v1578_v7  ;;  %1136 = vmatmul.f32.gmra.mxu0 %v3348_v16 }
 0x129   : > { %1209 = vmatmul.f32.gmra.mxu1 %v3271_v57  ;;  %1587 = vmatpush.msra.mxu3 %v1586_v52 }
 0x12a   : > { %1784 = vmatpush.msrb.mxu2 %v1584_v36 }
 0x12b   : > { %1276 = vmatmul.f32.gmra.mxu2 %v3312_v47  ;;  %1343 = vmatmul.f32.gmra.mxu3 %v3325_v43 }
 0x12c   : > { %1788 = vmatpush.msrb.mxu2 %v1590_v0  ;;  %1593 = vmatpush.msra.mxu3 %v1592_v63 }
 0x12e   : > { %1835 = vmatpush.msrb.mxu3 %v1485_v24 }
 0x130   : > { %1837 = vmatpush.msrb.mxu3 %v3301_v40  ;;  %1144 = vmatmul.f32.gmra.mxu0 %v1143_v54 }
 0x131   : > { %1213 = vmatmul.f32.gmra.mxu1 %v3299_v9 }
 0x132   : > { %1839 = vmatpush.msrb.mxu3 %v3306_v25 }
 0x133   : > { %1281 = vmatmul.f32.gmra.mxu2 %v3339_v41  ;;  %1349 = vmatmul.f32.gmra.mxu3 %v3351_v42 }
 0x134   : > { %1841 = vmatpush.msrb.mxu3 %v3316_v12 }
 0x138   : > { %1152 = vmatmul.f32.gmra.mxu0 %v1151_v31 }
 0x139   : > { %1217 = vmatmul.f32.gmra.mxu1 %v3327_v59 }
 0x13b   : > { %1286 = vmatmul.f32.gmra.mxu2 %v3360_v17  ;;  %1355 = vmatmul.f32.gmra.mxu3 %v3369_v62 }
 0x140   : > { %1388 = vmatmul.f32.vlgmr.msra.gmra.mxu0 %v3154_v23 }
 0x141   : > { %1221 = vmatmul.f32.gmra.mxu1 %v3353_v44 }
 0x143   : > { %1498 = vmatmul.f32.vlgmr.msra.gmra.mxu2 %v3207_v39  ;;  %1595 = vmatmul.f32.vlgmr.msra.gmra.mxu3 %v3154_v23 }
 0x148   : > { %1392 = vmatmul.f32.gmra.mxu0 %v3176_v58 }
 0x149   : > { %1441 = vmatmul.f32.vlgmr.msra.gmra.mxu1 %v3154_v23 }
 0x14b   : > { %1506 = vmatmul.f32.gmra.mxu2 %v3238_v6  ;;  %1599 = vmatmul.f32.gmra.mxu3 %v3176_v58 }
 0x14f   : > { %v3479_v12 = vpop.permute.xlu2 %1008 }
 0x150   : > { %1396 = vmatmul.f32.gmra.mxu0 %v3204_v19 }
 0x151   : > { %1445 = vmatmul.f32.gmra.mxu1 %v3176_v58 }
 0x153   : > { %1514 = vmatmul.f32.gmra.mxu2 %v3266_v8  ;;  %1603 = vmatmul.f32.gmra.mxu3 %v3204_v19 }
 0x158   : > { %1400 = vmatmul.f32.gmra.mxu0 %v3240_v10 }
 0x159   : > { %1449 = vmatmul.f32.gmra.mxu1 %v3204_v19 }
 0x15b   : > { %1522 = vmatmul.f32.gmra.mxu2 %v3294_v28  ;;  %1607 = vmatmul.f32.gmra.mxu3 %v3240_v10 }
 0x160   : > { %1404 = vmatmul.f32.gmra.mxu0 %v3271_v57 }
 0x161   : > { %1453 = vmatmul.f32.gmra.mxu1 %v3240_v10 }
 0x163   : > { %1530 = vmatmul.f32.gmra.mxu2 %v3321_v30  ;;  %1611 = vmatmul.f32.gmra.mxu3 %v3271_v57 }
 0x168   : > { %1408 = vmatmul.f32.gmra.mxu0 %v3299_v9 }
 0x169   : > { %1457 = vmatmul.f32.gmra.mxu1 %v3271_v57 }
 0x16b   : > { %1538 = vmatmul.f32.gmra.mxu2 %v3348_v16  ;;  %1615 = vmatmul.f32.gmra.mxu3 %v3299_v9  ;;  %v3495_v35 = vpop.permute.xlu2 %1013  ;;  %v3512_v16 = vpop.permute.xlu0 %1018 }
 0x170   : > { %1412 = vmatmul.f32.gmra.mxu0 %v3327_v59 }
 0x171   : > { %1461 = vmatmul.f32.gmra.mxu1 %v3299_v9 }
 0x173   : > { %1546 = vmatmul.f32.gmra.mxu2 %v1143_v54  ;;  %1619 = vmatmul.f32.gmra.mxu3 %v3327_v59 }
 0x178   : > { %1416 = vmatmul.f32.gmra.mxu0 %v3353_v44 }
 0x179   : > { %1465 = vmatmul.f32.gmra.mxu1 %v3327_v59 }
 0x17b   : > { %1554 = vmatmul.f32.gmra.mxu2 %v1151_v31  ;;  %1623 = vmatmul.f32.gmra.mxu3 %v3353_v44 }
 0x17d   : > { %v1097_v39 = vpop.f32.mrf.mxu0 }
 0x17e   : > { %v1098_v18 = vadd.f32 %v1097_v39, %v3479_v12 }
 0x180   : > { %1653 = vmatmul.f32.vlgmr.msrb.gmra.mxu0 %v3160_v11 }
 0x181   : > { %1469 = vmatmul.f32.gmra.mxu1 %v3353_v44 }
 0x183   : > { %1790 = vmatmul.f32.vlgmr.msrb.gmra.mxu2 %v3154_v23  ;;  %1843 = vmatmul.f32.vlgmr.msrb.gmra.mxu3 %v3154_v23 }
 0x185   : > { %v3419_v6 = vpop.f32.mrf.mxu0  ;;  %v3421_v8 = vpop.f32.mrf.mxu3 }
 0x186   : > { %v1194_v28 = vpop.f32.mrf.mxu1  ;;  %v1252_v40 = vpop.f32.mrf.mxu2  ;;  %v1106_v22 = vadd.f32 %v3419_v6, %v3495_v35 }
 0x187   : > { %v1195_v30 = vadd.f32 %v1194_v28, %v1098_v18  ;;  %v3528_v28 = vpop.permute.xlu2 %1028 }
 0x188   : > { %1658 = vmatmul.f32.gmra.mxu0 %v3190_v34 }
 0x189   : > { %1715 = vmatmul.f32.vlgmr.msrb.gmra.mxu1 %v3174_v56  ;;  %v1253_v7 = vadd.f32 %v1252_v40, %v1195_v30 }
 0x18b   : > { %1794 = vmatmul.f32.gmra.mxu2 %v3176_v58  ;;  %1847 = vmatmul.f32.gmra.mxu3 %v3176_v58  ;;  %v1315_v20 = vadd.f32 %v3421_v8, %v1253_v7 }
 0x18d   : > { %v3427_v11 = vpop.f32.mrf.mxu0  ;;  %v3429_v5 = vpop.f32.mrf.mxu3 }
 0x18e   : > { %v1198_v38 = vpop.f32.mrf.mxu1  ;;  %v1257_v23 = vpop.f32.mrf.mxu2  ;;  %v1114_v29 = vadd.f32 %v3427_v11, %v3512_v16 }
 0x18f   : > { %v1199_v14 = vadd.f32 %v1198_v38, %v1106_v22 }
 0x190   : > { %1663 = vmatmul.f32.gmra.mxu0 %v3219_v27 }
 0x191   : > { %1721 = vmatmul.f32.gmra.mxu1 %v3210_v26  ;;  %v1258_v1 = vadd.f32 %v1257_v23, %v1199_v14 }
 0x193   : > { %1798 = vmatmul.f32.gmra.mxu2 %v3204_v19  ;;  %1851 = vmatmul.f32.gmra.mxu3 %v3204_v19  ;;  %v1321_v50 = vadd.f32 %v3429_v5, %v1258_v1  ;;  %v3545_v1 = vpop.permute.xlu0 %1033 }
 0x195   : > { %v3435_v34 = vpop.f32.mrf.mxu0  ;;  %v3437_v56 = vpop.f32.mrf.mxu3 }
 0x196   : > { %v1202_v25 = vpop.f32.mrf.mxu1  ;;  %v3439_v58 = vpop.f32.mrf.mxu2 }
 0x198   : > { %1668 = vmatmul.f32.gmra.mxu0 %v3252_v48 }
 0x199   : > { %1727 = vmatmul.f32.gmra.mxu1 %v3235_v15 }
 0x19b   : > { %1802 = vmatmul.f32.gmra.mxu2 %v3240_v10  ;;  %1855 = vmatmul.f32.gmra.mxu3 %v3240_v10 }
 0x19d   : > { %v3445_v26 = vpop.f32.mrf.mxu0  ;;  %v3447_v27 = vpop.f32.mrf.mxu3 }
 0x19e   : > { %v3449_v19 = vpop.f32.mrf.mxu1  ;;  %v3451_v33 = vpop.f32.mrf.mxu2  ;;  %v1130_v5 = vadd.f32 %v3445_v26, %v3528_v28 }
 0x1a0   : > { %1673 = vmatmul.f32.gmra.mxu0 %v3284_v3 }
 0x1a1   : > { %1733 = vmatmul.f32.gmra.mxu1 %v3269_v53 }
 0x1a3   : > { %1806 = vmatmul.f32.gmra.mxu2 %v3271_v57  ;;  %1859 = vmatmul.f32.gmra.mxu3 %v3271_v57 }
 0x1a5   : > { %v3457_v15 = vpop.f32.mrf.mxu0 }
 0x1a6   : > { %v3459_v48 = vpop.f32.mrf.mxu1  ;;  %v3461_v10 = vpop.f32.mrf.mxu2 }
 0x1a7   : > { %v3463_v32 = vpop.f32.mrf.mxu3  ;;  %v1211_v30 = vadd.f32 %v3459_v48, %v1130_v5 }
 0x1a8   : > { %1678 = vmatmul.f32.gmra.mxu0 %v3312_v47 }
 0x1a9   : > { %1739 = vmatmul.f32.gmra.mxu1 %v3297_v13 }
 0x1ab   : > { %1810 = vmatmul.f32.gmra.mxu2 %v3299_v9  ;;  %1863 = vmatmul.f32.gmra.mxu3 %v3299_v9 }
 0x1ad   : > { %v3469_v53 = vpop.f32.mrf.mxu0 }
 0x1ae   : > { %v3471_v3 = vpop.f32.mrf.mxu1  ;;  %v3473_v57 = vpop.f32.mrf.mxu2 }
 0x1af   : > { %v3475_v4 = vpop.f32.mrf.mxu3 }
 0x1b0   : > { %1683 = vmatmul.f32.gmra.mxu0 %v3339_v41 }
 0x1b1   : > { %1745 = vmatmul.f32.gmra.mxu1 %v3325_v43 }
 0x1b3   : > { %1814 = vmatmul.f32.gmra.mxu2 %v3327_v59  ;;  %1867 = vmatmul.f32.gmra.mxu3 %v3327_v59 }
 0x1b5   : > { %v3483_v13 = vpop.f32.mrf.mxu0 }
 0x1b6   : > { %v3485_v9 = vpop.f32.mrf.mxu1  ;;  %v3487_v47 = vpop.f32.mrf.mxu2 }
 0x1b7   : > { %v3490_v24 = vpop.f32.mrf.mxu3 }
 0x1b8   : > { %1688 = vmatmul.f32.gmra.mxu0 %v3360_v17 }
 0x1b9   : > { %1751 = vmatmul.f32.gmra.mxu1 %v3351_v42 }
 0x1bb   : > { %1818 = vmatmul.f32.gmra.mxu2 %v3353_v44  ;;  %1871 = vmatmul.f32.gmra.mxu3 %v3353_v44  ;;  %v1203_v44 = vadd.f32 %v1202_v25, %v1114_v29 }
 0x1bd   : > { %v1389_v43 = vpop.f32.mrf.mxu0  ;;  %v1263_v63 = vadd.f32 %v3439_v58, %v1203_v44 }
 0x1be   : > { %v3498_v59 = vpop.f32.mrf.mxu1  ;;  %v3500_v60 = vpop.f32.mrf.mxu2  ;;  %v1390_v36 = vadd.f32 %v1389_v43, %v1315_v20 }
 0x1bf   : > { %v3504_v37 = vpop.f32.mrf.mxu3  ;;  %v1327_v6 = vadd.f32 %v3437_v56, %v1263_v63 }
 0x1c1   : > { %1757 = vmatmul.f32.gmra.mxu1 %v3369_v62  ;;  %v3522_v62 = vpop.permute.xlu1 %1023 }
 0x1c2   : > { %v1122_v31 = vadd.f32 %v3435_v34, %v3522_v62 }
 0x1c4   : > { %v1207_v8 = vadd.f32 %v3449_v19, %v1122_v31 }
 0x1c5   : > { %v1393_v41 = vpop.f32.mrf.mxu0 }
 0x1c6   : > { %v1442_v51 = vpop.f32.mrf.mxu1  ;;  %v3508_v61 = vpop.f32.mrf.mxu2  ;;  %v1394_v55 = vadd.f32 %v1393_v41, %v1321_v50  ;;  %v1268_v34 = vadd.f32 %v3451_v33, %v1207_v8 }
 0x1c7   : > { %v1443_v0 = vadd.f32 %v1442_v51, %v1390_v36  ;;  %v3510_v45 = vpop.f32.mrf.mxu3  ;;  %v1273_v36 = vadd.f32 %v3461_v10, %v1211_v30 }
 0x1c8   : > { %v1333_v22 = vadd.f32 %v3447_v27, %v1268_v34 }
 0x1c9   : > { %v2326_v42 = vmul.f32 -1.442695, %v1443_v0 }
 0x1cb   : > { %2419 = vpow2.f32 %v2326_v42  ;;  %v1138_v42 = vadd.f32 %v3457_v15, %v3545_v1 }
 0x1cd   : > { %v1397_v52 = vpop.f32.mrf.mxu0 }
 0x1ce   : > { %v1446_v49 = vpop.f32.mrf.mxu1  ;;  %v3517_v17 = vpop.f32.mrf.mxu2  ;;  %v1398_v40 = vadd.f32 %v1397_v52, %v1327_v6  ;;  %v1215_v52 = vadd.f32 %v3471_v3, %v1138_v42 }
 0x1cf   : > { %v1447_v46 = vadd.f32 %v1446_v49, %v1394_v55  ;;  %v3520_v54 = vpop.f32.mrf.mxu3 }
 0x1d1   : > { %v2420_v21 = vpop.eup %2419  ;;  %v2328_v2 = vmul.f32 -1.442695, %v1447_v46  ;;  %v1339_v46 = vadd.f32 %v3463_v32, %v1273_v36 }
 0x1d2   : > { %v1923_v39 = vadd.f32 1.0, %v2420_v21 }
 0x1d3   : > { %2421 = vpow2.f32 %v2328_v2  ;;  %v2483_v2 = vld [vmem:[%s2728_s28] sm:$0xff] }
 0x1d4   : > { %2423 = vrcp.f32 %v1923_v39  ;;  %v1950_v33 = vand.u32 2147483648, %v1923_v39  ;;  %v1948_v0 = vand.u32 2147483647, %v1923_v39  ;;  %vm1944_vm3 = vweird.f32 %v1923_v39 }
 0x1d5   : > { %v1401_v11 = vpop.f32.mrf.mxu0 }
 0x1d6   : > { %v1450_v38 = vpop.f32.mrf.mxu1  ;;  %v3532_v23 = vpop.f32.mrf.mxu2  ;;  %v1402_v14 = vadd.f32 %v1401_v11, %v1333_v22  ;;  %v1951_v49 = vor.u32 1.1754944e-38, %v1950_v33  ;;  %vm1949_vm5 = vcmp.eq.f32.partialorder %v1948_v0, 8.507059e+37 }
 0x1d7   : > { %v1451_v25 = vadd.f32 %v1450_v38, %v1398_v40  ;;  %v3535_v58 = vpop.f32.mrf.mxu3  ;;  %v1278_v40 = vadd.f32 %v3473_v57, %v1215_v52  ;;  %v3562_v38 = vpop.permute.xlu1 %1038 }
 0x1d8   : > { %v1146_v57 = vadd.f32 %v3469_v53, %v3562_v38 }
 0x1d9   : > { %v2422_v56 = vpop.eup %2421  ;;  %v2330_v18 = vmul.f32 -1.442695, %v1451_v25 }
 0x1da   : > { %v2424_v19 = vpop.eup %2423  ;;  %v3538_v43 = vadd.f32 1.0, %v2422_v56 }
 0x1db   : > { %v1940_v7 = vmul.f32 %v2424_v19, %v1923_v39  ;;  %2425 = vpow2.f32 %v2330_v18  ;;  %vm1945_vm2 = vweird.f32 %v2424_v19 }
 0x1dc   : > { %2427 = vrcp.f32 %v3538_v43  ;;  %vm1946_vm4 = vmor %vm1944_vm3, %vm1945_vm2  ;;  %v1980_v11 = vand.u32 2147483648, %v3538_v43  ;;  %v1978_v25 = vand.u32 2147483647, %v3538_v43  ;;  %vm1974_vm7 = vweird.f32 %v3538_v43 }
 0x1dd   : > { %v1941_v26 = vsub.f32 1.0, %v1940_v7  ;;  %v1405_v20 = vpop.f32.mrf.mxu0 }
 0x1de   : > { %v1454_v41 = vpop.f32.mrf.mxu1  ;;  %v3543_v51 = vpop.f32.mrf.mxu2  ;;  %v1406_v8 = vadd.f32 %v1405_v20, %v1339_v46  ;;  %v1981_v20 = vor.u32 1.1754944e-38, %v1980_v11  ;;  %vm1979_vm9 = vcmp.eq.f32.partialorder %v1978_v25, 8.507059e+37 }
 0x1df   : > { %v1942_v48 = vmul.f32 %v2424_v19, %v1941_v26  ;;  %v1455_v29 = vadd.f32 %v1454_v41, %v1402_v14  ;;  %v3547_v27 = vpop.f32.mrf.mxu3  ;;  %v1345_v26 = vadd.f32 %v3475_v4, %v1278_v40  ;;  %v1219_v14 = vadd.f32 %v3485_v9, %v1146_v57  ;;  %v3580_v41 = vpop.permute.xlu2 %1043 }
 0x1e1   : > { %v2426_v44 = vpop.eup %2425  ;;  %v1943_v50 = vadd.f32 %v2424_v19, %v1942_v48  ;;  %v2332_v55 = vmul.f32 -1.442695, %v1455_v29  ;;  %v1283_v42 = vadd.f32 %v3487_v47, %v1219_v14 }
 0x1e2   : > { %v2428_v10 = vpop.eup %2427  ;;  %v3552_v63 = vadd.f32 1.0, %v2426_v44 }
 0x1e3   : > { %v1947_v21 = vsel %vm1946_vm4, %v2424_v19, %v1943_v50  ;;  %v1970_v31 = vmul.f32 %v2428_v10, %v3538_v43  ;;  %2429 = vpow2.f32 %v2332_v55  ;;  %vm1975_vm6 = vweird.f32 %v2428_v10  ;;  %v2484_v43 = vld [vmem:[%s2728_s28 + $0x10] sm:$0xff] }
 0x1e4   : > { %v1952_v15 = vsel %vm1949_vm5, %v1951_v49, %v1947_v21  ;;  %2431 = vrcp.f32 %v3552_v63  ;;  %vm1976_vm8 = vmor %vm1974_vm7, %vm1975_vm6  ;;  %v2010_v44 = vand.u32 2147483648, %v3552_v63  ;;  %v1154_v50 = vadd.f32 %v3483_v13, %v3580_v41 }
 0x1e5   : > { %v2179_v39 = vmul.f32 %v2483_v2, %v1952_v15  ;;  %v1971_v6 = vsub.f32 1.0, %v1970_v31  ;;  %v1409_v3 = vpop.f32.mrf.mxu0  ;;  %v2008_v49 = vand.u32 2147483647, %v3552_v63  ;;  %vm2004_vm11 = vweird.f32 %v3552_v63 }
 0x1e6   : > { %v1458_v5 = vpop.f32.mrf.mxu1  ;;  %v3560_v32 = vpop.f32.mrf.mxu2  ;;  %v1410_v29 = vadd.f32 %v1409_v3, %v1345_v26  ;;  %v1351_v13 = vadd.f32 %v3490_v24, %v1283_v42 }
 0x1e7   : > { %2195 = vst [vmem:[%s3566_s30] sm:$0xff] %v2179_v39  ;;  %v1972_v34 = vmul.f32 %v2428_v10, %v1971_v6  ;;  %v1459_v56 = vadd.f32 %v1458_v5, %v1406_v8  ;;  %v3570_v18 = vpop.f32.mrf.mxu3  ;;  %v2011_v39 = vor.u32 1.1754944e-38, %v2010_v44  ;;  %v1223_v6 = vadd.f32 %v3498_v59, %v1154_v50 }
 0x1e8   : > { %vm2009_vm13 = vcmp.eq.f32.partialorder %v2008_v49, 8.507059e+37 }
 0x1e9   : > { %v2430_v19 = vpop.eup %2429  ;;  %v1973_v30 = vadd.f32 %v2428_v10, %v1972_v34  ;;  %v2334_v22 = vmul.f32 -1.442695, %v1459_v56  ;;  %v1288_v59 = vadd.f32 %v3500_v60, %v1223_v6 }
 0x1ea   : > { %v2432_v7 = vpop.eup %2431  ;;  %v3577_v33 = vadd.f32 1.0, %v2430_v19 }
 0x1eb   : > { %v1977_v36 = vsel %vm1976_vm8, %v2428_v10, %v1973_v30  ;;  %v2000_v53 = vmul.f32 %v2432_v7, %v3552_v63  ;;  %2433 = vpow2.f32 %v2334_v22  ;;  %vm2005_vm10 = vweird.f32 %v2432_v7  ;;  %v2485_v63 = vld [vmem:[%s2728_s28 + $0x20] sm:$0xff] }
 0x1ec   : > { %v1982_v48 = vsel %vm1979_vm9, %v1981_v20, %v1977_v36  ;;  %2435 = vrcp.f32 %v3577_v33  ;;  %vm2006_vm12 = vmor %vm2004_vm11, %vm2005_vm10  ;;  %v2040_v56 = vand.u32 2147483648, %v3577_v33  ;;  %v2038_v22 = vand.u32 2147483647, %v3577_v33 }
 0x1ed   : > { %v2181_v0 = vmul.f32 %v2484_v43, %v1982_v48  ;;  %v2001_v4 = vsub.f32 1.0, %v2000_v53  ;;  %v1413_v9 = vpop.f32.mrf.mxu0  ;;  %vm2034_vm15 = vweird.f32 %v3577_v33  ;;  %v1357_v43 = vadd.f32 %v3504_v37, %v1288_v59 }
 0x1ee   : > { %v1462_v55 = vpop.f32.mrf.mxu1  ;;  %v3588_v10 = vpop.f32.mrf.mxu2  ;;  %v1414_v25 = vadd.f32 %v1413_v9, %v1351_v13  ;;  %v2041_v60 = vor.u32 1.1754944e-38, %v2040_v56  ;;  %vm2039_vm1 = vcmp.eq.f32.partialorder %v2038_v22, 8.507059e+37  ;;  %v2486_v9 = vld [vmem:[%s2728_s28 + $0x30] sm:$0xff] }
 0x1ef   : > { %2197 = vst [vmem:[%s3566_s30 + $0x10] sm:$0xff] %v2181_v0  ;;  %v2002_v52 = vmul.f32 %v2432_v7, %v2001_v4  ;;  %v1463_v46 = vadd.f32 %v1462_v55, %v1410_v29  ;;  %v3592_v21 = vpop.f32.mrf.mxu3  ;;  %v1500_v55 = vadd.f32 %v3508_v61, %v3479_v12 }
 0x1f1   : > { %v2434_v31 = vpop.eup %2433  ;;  %v2003_v15 = vadd.f32 %v2432_v7, %v2002_v52  ;;  %v2336_v47 = vmul.f32 -1.442695, %v1463_v46  ;;  %v1597_v61 = vadd.f32 %v3510_v45, %v1500_v55  ;;  %v1508_v45 = vadd.f32 %v3517_v17, %v3495_v35 }
 0x1f2   : > { %v2436_v2 = vpop.eup %2435  ;;  %v3597_v8 = vadd.f32 1.0, %v2434_v31 }
 0x1f3   : > { %v2007_v3 = vsel %vm2006_vm12, %v2432_v7, %v2003_v15  ;;  %v2030_v40 = vmul.f32 %v2436_v2, %v3577_v33  ;;  %2437 = vpow2.f32 %v2336_v47  ;;  %vm2035_vm14 = vweird.f32 %v2436_v2 }
 0x1f4   : > { %v2012_v11 = vsel %vm2009_vm13, %v2011_v39, %v2007_v3  ;;  %2439 = vrcp.f32 %v3597_v8  ;;  %vm2036_vm0 = vmor %vm2034_vm15, %vm2035_vm14  ;;  %v2070_v52 = vand.u32 2147483648, %v3597_v8  ;;  %v2068_v31 = vand.u32 2147483647, %v3597_v8 }
 0x1f5   : > { %v2183_v5 = vmul.f32 %v2485_v63, %v2012_v11  ;;  %v2031_v34 = vsub.f32 1.0, %v2030_v40  ;;  %v1417_v24 = vpop.f32.mrf.mxu0  ;;  %vm2064_vm3 = vweird.f32 %v3597_v8  ;;  %v1601_v35 = vadd.f32 %v3520_v54, %v1508_v45 }
 0x1f6   : > { %v1466_v57 = vpop.f32.mrf.mxu1  ;;  %v3604_v19 = vpop.f32.mrf.mxu2  ;;  %v1418_v44 = vadd.f32 %v1417_v24, %v1357_v43  ;;  %v2071_v6 = vor.u32 1.1754944e-38, %v2070_v52  ;;  %vm2069_vm5 = vcmp.eq.f32.partialorder %v2068_v31, 8.507059e+37  ;;  %v1516_v54 = vadd.f32 %v3532_v23, %v3512_v16 }
 0x1f7   : > { %2199 = vst [vmem:[%s3566_s30 + $0x20] sm:$0xff] %v2183_v5  ;;  %v2032_v30 = vmul.f32 %v2436_v2, %v2031_v34  ;;  %v1467_v7 = vadd.f32 %v1466_v57, %v1414_v25  ;;  %v3608_v26 = vpop.f32.mrf.mxu3  ;;  %v2487_v5 = vld [vmem:[%s2728_s28 + $0x40] sm:$0xff] }
 0x1f8   : > { %v1605_v16 = vadd.f32 %v3535_v58, %v1516_v54 }
 0x1f9   : > { %v2438_v14 = vpop.eup %2437  ;;  %v2033_v20 = vadd.f32 %v2436_v2, %v2032_v30  ;;  %v2338_v36 = vmul.f32 -1.442695, %v1467_v7 }
 0x1fa   : > { %v2440_v53 = vpop.eup %2439  ;;  %v3611_v48 = vadd.f32 1.0, %v2438_v14 }
 0x1fb   : > { %v2037_v0 = vsel %vm2036_vm0, %v2436_v2, %v2033_v20  ;;  %v2060_v4 = vmul.f32 %v2440_v53, %v3597_v8  ;;  %2441 = vpow2.f32 %v2338_v36  ;;  %vm2065_vm2 = vweird.f32 %v2440_v53 }
 0x1fc   : > { %v2042_v29 = vsel %vm2039_vm1, %v2041_v60, %v2037_v0  ;;  %2443 = vrcp.f32 %v3611_v48  ;;  %vm2066_vm4 = vmor %vm2064_vm3, %vm2065_vm2  ;;  %v2100_v56 = vand.u32 2147483648, %v3611_v48  ;;  %v2098_v22 = vand.u32 2147483647, %v3611_v48 }
 0x1fd   : > { %v2185_v42 = vmul.f32 %v2486_v9, %v2042_v29  ;;  %v2061_v33 = vsub.f32 1.0, %v2060_v4  ;;  %v1654_v50 = vpop.f32.mrf.mxu0  ;;  %vm2094_vm7 = vweird.f32 %v3611_v48 }
 0x1fe   : > { %v1470_v37 = vpop.f32.mrf.mxu1  ;;  %v3620_v49 = vpop.f32.mrf.mxu2  ;;  %v1655_v25 = vadd.f32 %v1654_v50, %v1597_v61  ;;  %v2101_v17 = vor.u32 1.1754944e-38, %v2100_v56  ;;  %vm2099_vm9 = vcmp.eq.f32.partialorder %v2098_v22, 8.507059e+37  ;;  %v1524_v56 = vadd.f32 %v3543_v51, %v3522_v62 }
 0x1ff   : > { %2201 = vst [vmem:[%s3566_s30 + $0x30] sm:$0xff] %v2185_v42  ;;  %v2062_v46 = vmul.f32 %v2440_v53, %v2061_v33  ;;  %v1471_v15 = vadd.f32 %v1470_v37, %v1418_v44  ;;  %v3624_v47 = vpop.f32.mrf.mxu3  ;;  %v2488_v42 = vld [vmem:[%s2728_s28 + $0x50] sm:$0xff] }
 0x200   : > { %v1609_v51 = vadd.f32 %v3547_v27, %v1524_v56  ;;  %v1532_v27 = vadd.f32 %v3560_v32, %v3528_v28  ;;  %v1540_v56 = vadd.f32 %v3588_v10, %v3545_v1 }
 0x201   : > { %v2442_v2 = vpop.eup %2441  ;;  %v2063_v13 = vadd.f32 %v2440_v53, %v2062_v46  ;;  %v2340_v39 = vmul.f32 -1.442695, %v1471_v15 }
 0x202   : > { %v2444_v12 = vpop.eup %2443  ;;  %v3628_v3 = vadd.f32 1.0, %v2442_v2 }
 0x203   : > { %v2067_v40 = vsel %vm2066_vm4, %v2440_v53, %v2063_v13  ;;  %v2090_v11 = vmul.f32 %v2444_v12, %v3611_v48  ;;  %2445 = vpow2.f32 %v2340_v39  ;;  %vm2095_vm6 = vweird.f32 %v2444_v12 }
 0x204   : > { %v2072_v63 = vsel %vm2069_vm5, %v2071_v6, %v2067_v40  ;;  %2447 = vrcp.f32 %v3628_v3  ;;  %vm2096_vm8 = vmor %vm2094_vm7, %vm2095_vm6  ;;  %v2128_v52 = vand.u32 2147483647, %v3628_v3  ;;  %v2130_v37 = vand.u32 2147483648, %v3628_v3 }
 0x205   : > { %v2187_v34 = vmul.f32 %v2487_v5, %v2072_v63  ;;  %v2091_v8 = vsub.f32 1.0, %v2090_v11  ;;  %v1659_v24 = vpop.f32.mrf.mxu0  ;;  %vm2124_vm11 = vweird.f32 %v3628_v3 }
 0x206   : > { %v1716_v59 = vpop.f32.mrf.mxu1  ;;  %v1791_v57 = vpop.f32.mrf.mxu2  ;;  %v1660_v44 = vadd.f32 %v1659_v24, %v1601_v35  ;;  %v2131_v23 = vor.u32 1.1754944e-38, %v2130_v37  ;;  %vm2129_vm13 = vcmp.eq.f32.partialorder %v2128_v52, 8.507059e+37 }
 0x207   : > { %2203 = vst [vmem:[%s3566_s30 + $0x40] sm:$0xff] %v2187_v34  ;;  %v2092_v30 = vmul.f32 %v2444_v12, %v2091_v8  ;;  %v1717_v7 = vadd.f32 %v1716_v59, %v1655_v25  ;;  %v1844_v14 = vpop.f32.mrf.mxu3  ;;  %v2489_v34 = vld [vmem:[%s2728_s28 + $0x60] sm:$0xff] }
 0x209   : > { %v2446_v20 = vpop.eup %2445  ;;  %v2093_v36 = vadd.f32 %v2444_v12, %v2092_v30  ;;  %v1792_v53 = vadd.f32 %v1791_v57, %v1717_v7 }
 0x20a   : > { %v2448_v60 = vpop.eup %2447  ;;  %v3640_v43 = vadd.f32 1.0, %v2446_v20 }
 0x20b   : > { %v2097_v0 = vsel %vm2096_vm8, %v2444_v12, %v2093_v36  ;;  %v2120_v4 = vmul.f32 %v2448_v60, %v3628_v3  ;;  %v1845_v29 = vadd.f32 %v1844_v14, %v1792_v53  ;;  %vm2125_vm10 = vweird.f32 %v2448_v60 }
 0x20c   : > { %v2102_v9 = vsel %vm2099_vm9, %v2101_v17, %v2097_v0  ;;  %2449 = vrcp.f32 %v3640_v43  ;;  %vm2126_vm12 = vmor %vm2124_vm11, %vm2125_vm10  ;;  %v2158_v58 = vand.u32 2147483647, %v3640_v43  ;;  %v2160_v59 = vand.u32 2147483648, %v3640_v43 }
 0x20d   : > { %v2189_v33 = vmul.f32 %v2488_v42, %v2102_v9  ;;  %v2121_v48 = vsub.f32 1.0, %v2120_v4  ;;  %v2327_v50 = vmul.f32 -1.442695, %v1845_v29  ;;  %v1664_v55 = vpop.f32.mrf.mxu0  ;;  %vm2154_vm15 = vweird.f32 %v3640_v43  ;;  %v2490_v4 = vld [vmem:[%s2728_s28 + $0x70] sm:$0xff] }
 0x20e   : > { %v1722_v46 = vpop.f32.mrf.mxu1  ;;  %v1795_v31 = vpop.f32.mrf.mxu2  ;;  %v1665_v24 = vadd.f32 %v1664_v55, %v1605_v16  ;;  %v2161_v62 = vor.u32 1.1754944e-38, %v2160_v59  ;;  %vm2159_vm1 = vcmp.eq.f32.partialorder %v2158_v58, 8.507059e+37 }
 0x20f   : > { %2205 = vst [vmem:[%s3566_s30 + $0x50] sm:$0xff] %v2189_v33  ;;  %v2122_v15 = vmul.f32 %v2448_v60, %v2121_v48  ;;  %2451 = vpow2.f32 %v2327_v50  ;;  %v1723_v2 = vadd.f32 %v1722_v46, %v1660_v44  ;;  %v1848_v13 = vpop.f32.mrf.mxu3 }
 0x211   : > { %v2123_v39 = vadd.f32 %v2448_v60, %v2122_v15  ;;  %v1796_v12 = vadd.f32 %v1795_v31, %v1723_v2 }
 0x212   : > { %v2450_v61 = vpop.eup %2449 }
 0x213   : > { %v2127_v6 = vsel %vm2126_vm12, %v2448_v60, %v2123_v39  ;;  %v2150_v40 = vmul.f32 %v2450_v61, %v3640_v43  ;;  %v1849_v11 = vadd.f32 %v1848_v13, %v1796_v12  ;;  %vm2155_vm14 = vweird.f32 %v2450_v61 }
 0x214   : > { %v2132_v63 = vsel %vm2129_vm13, %v2131_v23, %v2127_v6  ;;  %vm2156_vm0 = vmor %vm2154_vm15, %vm2155_vm14  ;;  %v1613_v12 = vadd.f32 %v3570_v18, %v1532_v27  ;;  %v1556_v27 = vadd.f32 %v3620_v49, %v3580_v41 }
 0x215   : > { %v2452_v5 = vpop.eup %2451  ;;  %v2191_v8 = vmul.f32 %v2489_v34, %v2132_v63  ;;  %v2151_v25 = vsub.f32 1.0, %v2150_v40  ;;  %v2329_v45 = vmul.f32 -1.442695, %v1849_v11  ;;  %v1669_v3 = vpop.f32.mrf.mxu0 }
 0x216   : > { %v1924_v57 = vadd.f32 1.0, %v2452_v5  ;;  %v1728_v30 = vpop.f32.mrf.mxu1  ;;  %v1799_v22 = vpop.f32.mrf.mxu2  ;;  %v1670_v9 = vadd.f32 %v1669_v3, %v1609_v51  ;;  %v1625_v49 = vadd.f32 %v3624_v47, %v1556_v27 }
 0x217   : > { %2207 = vst [vmem:[%s3566_s30 + $0x60] sm:$0xff] %v2191_v8  ;;  %v2152_v7 = vmul.f32 %v2450_v61, %v2151_v25  ;;  %2453 = vpow2.f32 %v2329_v45  ;;  %v1729_v14 = vadd.f32 %v1728_v30, %v1665_v24  ;;  %v1852_v20 = vpop.f32.mrf.mxu3  ;;  %v2491_v25 = vld [vmem:[%s2728_s28 + $0x8] sm:$0xff] }
 0x218   : > { %2455 = vrcp.f32 %v1924_v57  ;;  %v1963_v31 = vand.u32 2147483647, %v1924_v57  ;;  %v1965_v15 = vand.u32 2147483648, %v1924_v57  ;;  %vm1959_vm3 = vweird.f32 %v1924_v57 }
 0x219   : > { %v2153_v36 = vadd.f32 %v2450_v61, %v2152_v7  ;;  %v1800_v53 = vadd.f32 %v1799_v22, %v1729_v14 }
 0x21a   : > { %vm1964_vm5 = vcmp.eq.f32.partialorder %v1963_v31, 8.507059e+37  ;;  %v1966_v40 = vor.u32 1.1754944e-38, %v1965_v15 }
 0x21b   : > { %v2157_v60 = vsel %vm2156_vm0, %v2450_v61, %v2153_v36  ;;  %v1853_v35 = vadd.f32 %v1852_v20, %v1800_v53  ;;  %v1617_v36 = vadd.f32 %v3592_v21, %v1540_v56  ;;  %v1548_v53 = vadd.f32 %v3604_v19, %v3562_v38 }
 0x21c   : > { %v2162_v17 = vsel %vm2159_vm1, %v2161_v62, %v2157_v60 }
 0x21d   : > { %v2454_v0 = vpop.eup %2453  ;;  %v2193_v29 = vmul.f32 %v2490_v4, %v2162_v17  ;;  %v2331_v42 = vmul.f32 -1.442695, %v1853_v35  ;;  %v1674_v33 = vpop.f32.mrf.mxu0 }
 0x21e   : > { %v2456_v48 = vpop.eup %2455  ;;  %v1926_v44 = vadd.f32 1.0, %v2454_v0  ;;  %v1734_v50 = vpop.f32.mrf.mxu1  ;;  %v1675_v34 = vadd.f32 %v1674_v33, %v1613_v12 }
 0x21f   : > { %v1803_v43 = vpop.f32.mrf.mxu2  ;;  %2209 = vst [vmem:[%s3566_s30 + $0x70] sm:$0xff] %v2193_v29  ;;  %v1955_v55 = vmul.f32 %v2456_v48, %v1924_v57  ;;  %2457 = vpow2.f32 %v2331_v42  ;;  %v1735_v54 = vadd.f32 %v1734_v50, %v1670_v9  ;;  %v1856_v52 = vpop.f32.mrf.mxu3  ;;  %vm1960_vm2 = vweird.f32 %v2456_v48  ;;  %v2492_v9 = vld [vmem:[%s2728_s28 + $0x18] sm:$0xff] }
 0x220   : > { %2459 = vrcp.f32 %v1926_v44  ;;  %vm1961_vm4 = vmor %vm1959_vm3, %vm1960_vm2  ;;  %v1995_v58 = vand.u32 2147483648, %v1926_v44  ;;  %v1993_v57 = vand.u32 2147483647, %v1926_v44  ;;  %vm1989_vm7 = vweird.f32 %v1926_v44 }
 0x221   : > { %v1956_v37 = vsub.f32 1.0, %v1955_v55  ;;  %v1804_v46 = vadd.f32 %v1803_v43, %v1735_v54 }
 0x222   : > { %v1996_v62 = vor.u32 1.1754944e-38, %v1995_v58  ;;  %vm1994_vm9 = vcmp.eq.f32.partialorder %v1993_v57, 8.507059e+37 }
 0x223   : > { %v1957_v2 = vmul.f32 %v2456_v48, %v1956_v37  ;;  %v1857_v13 = vadd.f32 %v1856_v52, %v1804_v46 }
 0x225   : > { %v2458_v39 = vpop.eup %2457  ;;  %v1958_v61 = vadd.f32 %v2456_v48, %v1957_v2  ;;  %v2333_v16 = vmul.f32 -1.442695, %v1857_v13  ;;  %v1679_v23 = vpop.f32.mrf.mxu0 }
 0x226   : > { %v2460_v6 = vpop.eup %2459  ;;  %v3666_v28 = vadd.f32 1.0, %v2458_v39  ;;  %v1740_v32 = vpop.f32.mrf.mxu1  ;;  %v1680_v21 = vadd.f32 %v1679_v23, %v1617_v36 }
 0x227   : > { %v1807_v11 = vpop.f32.mrf.mxu2  ;;  %v1962_v63 = vsel %vm1961_vm4, %v2456_v48, %v1958_v61  ;;  %v1985_v5 = vmul.f32 %v2460_v6, %v1926_v44  ;;  %2461 = vpow2.f32 %v2333_v16  ;;  %v1860_v8 = vpop.f32.mrf.mxu3  ;;  %v1741_v3 = vadd.f32 %v1740_v32, %v1675_v34 }
 0x228   : > { %v1967_v18 = vsel %vm1964_vm5, %v1966_v40, %v1962_v63  ;;  %2463 = vrcp.f32 %v3666_v28  ;;  %vm1990_vm6 = vweird.f32 %v2460_v6  ;;  %v2025_v42 = vand.u32 2147483648, %v3666_v28 }
 0x229   : > { %v2180_v24 = vmul.f32 %v2491_v25, %v1967_v18  ;;  %v1986_v45 = vsub.f32 1.0, %v1985_v5  ;;  %v1808_v30 = vadd.f32 %v1807_v11, %v1741_v3  ;;  %vm1991_vm8 = vmor %vm1989_vm7, %vm1990_vm6  ;;  %v1621_v48 = vadd.f32 %v3608_v26, %v1548_v53 }
 0x22a   : > { %v2023_v50 = vand.u32 2147483647, %v3666_v28  ;;  %vm2019_vm11 = vweird.f32 %v3666_v28  ;;  %v2026_v37 = vor.u32 1.1754944e-38, %v2025_v42 }
 0x22b   : > { %2196 = vst [vmem:[%s3566_s30 + $0x8] sm:$0xff] %v2180_v24  ;;  %v1987_v59 = vmul.f32 %v2460_v6, %v1986_v45  ;;  %v1861_v14 = vadd.f32 %v1860_v8, %v1808_v30 }
 0x22c   : > { %vm2024_vm13 = vcmp.eq.f32.partialorder %v2023_v50, 8.507059e+37 }
 0x22d   : > { %v2462_v22 = vpop.eup %2461  ;;  %v1988_v7 = vadd.f32 %v2460_v6, %v1987_v59  ;;  %v2335_v17 = vmul.f32 -1.442695, %v1861_v14  ;;  %v1684_v29 = vpop.f32.mrf.mxu0 }
 0x22e   : > { %v2464_v20 = vpop.eup %2463  ;;  %v3676_v1 = vadd.f32 1.0, %v2462_v22  ;;  %v1746_v10 = vpop.f32.mrf.mxu1  ;;  %v1685_v54 = vadd.f32 %v1684_v29, %v1621_v48  ;;  %v2494_v22 = vld [vmem:[%s2728_s28 + $0x38] sm:$0xff] }
 0x22f   : > { %v1811_v51 = vpop.f32.mrf.mxu2  ;;  %v1992_v60 = vsel %vm1991_vm8, %v2460_v6, %v1988_v7  ;;  %v2015_v35 = vmul.f32 %v2464_v20, %v3666_v28  ;;  %v1864_v0 = vpop.f32.mrf.mxu3  ;;  %v1747_v33 = vadd.f32 %v1746_v10, %v1680_v21  ;;  %vm2020_vm10 = vweird.f32 %v2464_v20  ;;  %v2493_v6 = vld [vmem:[%s2728_s28 + $0x28] sm:$0xff] }
 0x230   : > { %v1997_v4 = vsel %vm1994_vm9, %v1996_v62, %v1992_v60  ;;  %2465 = vrcp.f32 %v3676_v1  ;;  %vm2021_vm12 = vmor %vm2019_vm11, %vm2020_vm10  ;;  %v2053_v32 = vand.u32 2147483647, %v3676_v1  ;;  %v2055_v11 = vand.u32 2147483648, %v3676_v1 }
 0x231   : > { %v2182_v38 = vmul.f32 %v2492_v9, %v1997_v4  ;;  %v2016_v19 = vsub.f32 1.0, %v2015_v35  ;;  %2467 = vpow2.f32 %v2335_v17  ;;  %v1812_v43 = vadd.f32 %v1811_v51, %v1747_v33 }
 0x232   : > { %vm2049_vm15 = vweird.f32 %v3676_v1  ;;  %v2056_v24 = vor.u32 1.1754944e-38, %v2055_v11  ;;  %vm2054_vm1 = vcmp.eq.f32.partialorder %v2053_v32, 8.507059e+37 }
 0x233   : > { %2198 = vst [vmem:[%s3566_s30 + $0x18] sm:$0xff] %v2182_v38  ;;  %v2017_v44 = vmul.f32 %v2464_v20, %v2016_v19  ;;  %v1865_v46 = vadd.f32 %v1864_v0, %v1812_v43  ;;  %v2495_v38 = vld [vmem:[%s2728_s28 + $0x48] sm:$0xff] }
 0x235   : > { %v2018_v55 = vadd.f32 %v2464_v20, %v2017_v44  ;;  %v2337_v23 = vmul.f32 -1.442695, %v1865_v46  ;;  %v1689_v63 = vpop.f32.mrf.mxu0 }
 0x236   : > { %v2466_v52 = vpop.eup %2465  ;;  %v1752_v31 = vpop.f32.mrf.mxu1  ;;  %v1690_v18 = vadd.f32 %v1689_v63, %v1625_v49 }
 0x237   : > { %v1815_v26 = vpop.f32.mrf.mxu2  ;;  %v2468_v15 = vpop.eup %2467  ;;  %v2022_v2 = vsel %vm2021_vm12, %v2464_v20, %v2018_v55  ;;  %v2045_v13 = vmul.f32 %v2466_v52, %v3676_v1  ;;  %v1753_v39 = vadd.f32 %v1752_v31, %v1685_v54  ;;  %vm2050_vm14 = vweird.f32 %v2466_v52 }
 0x238   : > { %v1868_v12 = vpop.f32.mrf.mxu3  ;;  %v2027_v61 = vsel %vm2024_vm13, %v2026_v37, %v2022_v2  ;;  %v1932_v16 = vadd.f32 1.0, %v2468_v15  ;;  %vm2051_vm0 = vmor %vm2049_vm15, %vm2050_vm14 }
 0x239   : > { %v2184_v40 = vmul.f32 %v2493_v6, %v2027_v61  ;;  %v2046_v28 = vsub.f32 1.0, %v2045_v13  ;;  %v1816_v41 = vadd.f32 %v1815_v26, %v1753_v39  ;;  %v2496_v39 = vld [vmem:[%s2728_s28 + $0x58] sm:$0xff] }
 0x23a   : > { %2469 = vrcp.f32 %v1932_v16  ;;  %v2085_v1 = vand.u32 2147483648, %v1932_v16  ;;  %v2083_v60 = vand.u32 2147483647, %v1932_v16  ;;  %vm2079_vm3 = vweird.f32 %v1932_v16 }
 0x23b   : > { %2200 = vst [vmem:[%s3566_s30 + $0x28] sm:$0xff] %v2184_v40  ;;  %v2047_v5 = vmul.f32 %v2466_v52, %v2046_v28  ;;  %2471 = vpow2.f32 %v2337_v23  ;;  %v1869_v34 = vadd.f32 %v1868_v12, %v1816_v41  ;;  %v2497_v41 = vld [vmem:[%s2728_s28 + $0x68] sm:$0xff] }
 0x23c   : > { %v2086_v4 = vor.u32 1.1754944e-38, %v2085_v1  ;;  %vm2084_vm5 = vcmp.eq.f32.partialorder %v2083_v60, 8.507059e+37 }
 0x23d   : > { %v2048_v8 = vadd.f32 %v2466_v52, %v2047_v5  ;;  %v2339_v25 = vmul.f32 -1.442695, %v1869_v34 }
 0x23e   : > { %v1758_v47 = vpop.f32.mrf.mxu1 }
 0x23f   : > { %v1819_v45 = vpop.f32.mrf.mxu2  ;;  %v2052_v3 = vsel %vm2051_vm0, %v2466_v52, %v2048_v8  ;;  %2473 = vpow2.f32 %v2339_v25  ;;  %v1759_v56 = vadd.f32 %v1758_v47, %v1690_v18 }
 0x240   : > { %v2470_v58 = vpop.eup %2469  ;;  %v2057_v59 = vsel %vm2054_vm1, %v2056_v24, %v2052_v3  ;;  %v1872_v57 = vpop.f32.mrf.mxu3  ;;  %v2498_v24 = vld [vmem:[%s2728_s28 + $0x78] sm:$0xff] }
 0x241   : > { %v2472_v30 = vpop.eup %2471  ;;  %v2186_v7 = vmul.f32 %v2494_v22, %v2057_v59  ;;  %v2075_v14 = vmul.f32 %v2470_v58, %v1932_v16  ;;  %v1820_v20 = vadd.f32 %v1819_v45, %v1759_v56  ;;  %vm2080_vm2 = vweird.f32 %v2470_v58 }
 0x242   : > { %v1934_v36 = vadd.f32 1.0, %v2472_v30  ;;  %vm2081_vm4 = vmor %vm2079_vm3, %vm2080_vm2 }
 0x243   : > { %2202 = vst [vmem:[%s3566_s30 + $0x38] sm:$0xff] %v2186_v7  ;;  %v2076_v53 = vsub.f32 1.0, %v2075_v14  ;;  %v1873_v62 = vadd.f32 %v1872_v57, %v1820_v20 }
 0x244   : > { %2475 = vrcp.f32 %v1934_v36  ;;  %v2113_v50 = vand.u32 2147483647, %v1934_v36  ;;  %v2115_v43 = vand.u32 2147483648, %v1934_v36  ;;  %vm2109_vm7 = vweird.f32 %v1934_v36 }
 0x245   : > { %v2474_v10 = vpop.eup %2473  ;;  %v2077_v51 = vmul.f32 %v2470_v58, %v2076_v53  ;;  %v2341_v35 = vmul.f32 -1.442695, %v1873_v62 }
 0x246   : > { %v1936_v17 = vadd.f32 1.0, %v2474_v10  ;;  %vm2114_vm9 = vcmp.eq.f32.partialorder %v2113_v50, 8.507059e+37  ;;  %v2116_v46 = vor.u32 1.1754944e-38, %v2115_v43 }
 0x247   : > { %v2078_v0 = vadd.f32 %v2470_v58, %v2077_v51  ;;  %2477 = vpow2.f32 %v2341_v35 }
 0x248   : > { %2479 = vrcp.f32 %v1936_v17  ;;  %v2145_v31 = vand.u32 2147483648, %v1936_v17  ;;  %v2143_v2 = vand.u32 2147483647, %v1936_v17  ;;  %vm2139_vm11 = vweird.f32 %v1936_v17 }
 0x249   : > { %v2082_v21 = vsel %vm2081_vm4, %v2470_v58, %v2078_v0 }
 0x24a   : > { %v2476_v29 = vpop.eup %2475  ;;  %v2087_v9 = vsel %vm2084_vm5, %v2086_v4, %v2082_v21  ;;  %v2146_v23 = vor.u32 1.1754944e-38, %v2145_v31  ;;  %vm2144_vm13 = vcmp.eq.f32.partialorder %v2143_v2, 8.507059e+37 }
 0x24b   : > { %v2188_v19 = vmul.f32 %v2495_v38, %v2087_v9  ;;  %v2105_v42 = vmul.f32 %v2476_v29, %v1934_v36  ;;  %vm2110_vm6 = vweird.f32 %v2476_v29 }
 0x24c   : > { %vm2111_vm8 = vmor %vm2109_vm7, %vm2110_vm6 }
 0x24d   : > { %v2478_v33 = vpop.eup %2477  ;;  %2204 = vst [vmem:[%s3566_s30 + $0x48] sm:$0xff] %v2188_v19  ;;  %v2106_v48 = vsub.f32 1.0, %v2105_v42 }
 0x24e   : > { %v2480_v44 = vpop.eup %2479  ;;  %v1938_v55 = vadd.f32 1.0, %v2478_v33 }
 0x24f   : > { %v2107_v54 = vmul.f32 %v2476_v29, %v2106_v48  ;;  %v2135_v52 = vmul.f32 %v2480_v44, %v1936_v17  ;;  %vm2140_vm10 = vweird.f32 %v2480_v44 }
 0x250   : > { %2481 = vrcp.f32 %v1938_v55  ;;  %vm2141_vm12 = vmor %vm2139_vm11, %vm2140_vm10  ;;  %v2175_v11 = vand.u32 2147483648, %v1938_v55  ;;  %v2173_v5 = vand.u32 2147483647, %v1938_v55  ;;  %vm2169_vm15 = vweird.f32 %v1938_v55 }
 0x251   : > { %v2108_v27 = vadd.f32 %v2476_v29, %v2107_v54  ;;  %v2136_v37 = vsub.f32 1.0, %v2135_v52 }
 0x252   : > { %v2176_v8 = vor.u32 1.1754944e-38, %v2175_v11  ;;  %vm2174_vm1 = vcmp.eq.f32.partialorder %v2173_v5, 8.507059e+37 }
 0x253   : > { %v2112_v26 = vsel %vm2111_vm8, %v2476_v29, %v2108_v27  ;;  %v2137_v15 = vmul.f32 %v2480_v44, %v2136_v37 }
 0x254   : > { %v2117_v13 = vsel %vm2114_vm9, %v2116_v46, %v2112_v26 }
 0x255   : > { %v2190_v12 = vmul.f32 %v2496_v39, %v2117_v13  ;;  %v2138_v61 = vadd.f32 %v2480_v44, %v2137_v15 }
 0x256   : > { %v2482_v16 = vpop.eup %2481 }
 0x257   : > { %2206 = vst [vmem:[%s3566_s30 + $0x58] sm:$0xff] %v2190_v12  ;;  %v2142_v6 = vsel %vm2141_vm12, %v2480_v44, %v2138_v61  ;;  %v2165_v40 = vmul.f32 %v2482_v16, %v1938_v55  ;;  %vm2170_vm14 = vweird.f32 %v2482_v16 }
 0x258   : > { %v2147_v28 = vsel %vm2144_vm13, %v2146_v23, %v2142_v6  ;;  %vm2171_vm0 = vmor %vm2169_vm15, %vm2170_vm14 }
 0x259   : > { %v2192_v49 = vmul.f32 %v2497_v41, %v2147_v28  ;;  %v2166_v32 = vsub.f32 1.0, %v2165_v40 }
 0x25b   : > { %2208 = vst [vmem:[%s3566_s30 + $0x68] sm:$0xff] %v2192_v49  ;;  %v2167_v63 = vmul.f32 %v2482_v16, %v2166_v32 }
 0x25d   : > { %v2168_v34 = vadd.f32 %v2482_v16, %v2167_v63 }
 0x25f   : > { %v2172_v18 = vsel %vm2171_vm0, %v2482_v16, %v2168_v34 }
 0x260   : > { %v2177_v25 = vsel %vm2174_vm1, %v2176_v8, %v2172_v18 }
 0x261   : > { %v2194_v47 = vmul.f32 %v2498_v24, %v2177_v25 }
 0x263   : > { %2210 = vst [vmem:[%s3566_s30 + $0x78] sm:$0xff] %v2194_v47 }
 0x264   : > { %2556 = shalt.err (!%p2553_p13)
}
 0x265   : > { %s2616_s29 = smov 256   ;;  %s2617_s28 = smov 16  }
 0x266   : > { %2351 = dma.vmem_to_hbm [thread:$0]  (%p2699_p9), %s2227_s14, 2048, %s2229_s21, %s2212_s15, %s2616_s29, %s2616_s29, %s2617_s28  }
 0x267 PF: > { %s2243_s30 = sand.u32 1, %s2591_s18   ;;  %p2358_p0 = pnand %p2319_p12, %p2706_p11 }
 0x268   : > { %s2244_s9 = scalar_lea.sflag [#allocation4], %s2243_s30 }
 0x269   : > { %p2359_p1 = pneg %p2358_p0 }
 0x26b   : > { %2586 = dma.done.wait (%p2359_p1), %s2244_s9, 2048  }
 0x26c   : > { %2588 = vsyncadd (%p2359_p1), %s2244_s9, 4294965248  ;;  %s21_s23 = sadd.s32 1, %s2611_s23   ;;  %s3754_s18 = smov %s2595_s19 }
 0x26d   : > { %p18_p2 = scmp.ge.s32.totalorder %s21_s23, 4   ;;  %s3755_s19 = smov %s2599_s20 }
 0x26e   : > { %s3756_s20 = smov %s2704_s7  ;;  %s3757_s21 = smov %s2607_s22 }
 0x26f   : > { %s3758_s22 = smov %s3760_s26  ;;  %20 = sbr.rel (!%p18_p2) target bundleno = 6 (0x6), region = 85 }
 0x274   :  { %2250 = vsyncpa [#allocation3], 1 }
 0x275   :  { %2252 = vsyncpa [#allocation3 + $0x1], 1 }
 0x276   :  { %2253 = vsyncpa [#allocation4], 1 }
 0x277   :  { %2255 = vsyncpa [#allocation4 + $0x1], 1 }

</bundles_post_ra>
